<compile_context>
chip_gen: v7x
topology: tpu7x:2x2x1
jax: 0.10.0
libtpu: 0.0.40
codegen_flags: <defaults>
</compile_context>

<pallas_src>
import math
from functools import partial

import jax
import jax.numpy as jnp
from jax import lax
from jax.experimental import pallas as pl
from jax.experimental.pallas import tpu as pltpu


_INV_SQRT2 = 1.0 / math.sqrt(2.0)
_GELU_C = 0.7978845608028654  # sqrt(2/pi)


def _gelu(x):
    # TODO(synk): tanh-form GELU (EUP tanh); PyTorch nn.GELU() default is the exact erf
    # form (max abs diff ~1e-3) and Mosaic has no guaranteed erf lowering.
    return 0.5 * x * (1.0 + jnp.tanh(_GELU_C * (x + 0.044715 * x * x * x)))


def _silu(x):
    return x * jax.nn.sigmoid(x)


def _bf16(x):
    return x.astype(jnp.bfloat16)


def _shifted(x, off, row_idx):
    """x shifted along time by `off` samples with zero fill (== Conv1d zero padding).

    XLU sublane rotate + VPU edge mask: no scratch slab, no per-layer stores,
    no unaligned shifted loads.
    """
    if off == 0:
        return x
    T = x.shape[0]
    if off < 0:                                   # out[t] = x[t - d]
        d = -off
        return jnp.where(row_idx >= d, pltpu.roll(x, d, axis=0), 0.0)
    return jnp.where(row_idx < T - off, pltpu.roll(x, T - off, axis=0), 0.0)


# --------------------------------------------------------------------------
# Kernel A: WaveNet (input proj + residual blocks + skip sum) + mask + conv_in(1x1)
# --------------------------------------------------------------------------
def _wavenet_front_kernel(mel_ref, mask_ref, win_ref, bin_ref,
                          wd_ref, bd_ref, wo_ref, bo_ref, wcin_ref,
                          o_ref, *, seq_len, channels, n_layers, dilation_cycle):
    T, C = seq_len, channels
    dils = tuple(2 ** j for j in range(dilation_cycle))
    row = lax.broadcasted_iota(jnp.int32, (T, 1), 0)

    # input projection: silu(Conv1d(100, C, 1)(mel)) as one bf16 matmul
    x0 = jnp.dot(mel_ref[0], win_ref[...], preferred_element_type=jnp.float32)
    x0 = _silu(x0 + bin_ref[...])

    def layer_body(layer, d, x, skip):
        # Conv1d(C, 2C, 3, dilation=d, padding=d) as ONE im2col matmul (T,3C)x(3C,2C)
        xcat = _bf16(jnp.concatenate(
            [_shifted(x, -d, row), x, _shifted(x, d, row)], axis=-1))
        acc = jnp.dot(xcat, wd_ref[layer], preferred_element_type=jnp.float32)
        acc = acc + bd_ref[layer]
        # torch.chunk(y, 2, dim=channels): gate = first half, filter = second half
        z = jax.nn.sigmoid(acc[:, :C]) * jnp.tanh(acc[:, C:])
        # Conv1d(C, 2C, 1) output projection -> residual, skip
        y = jnp.dot(_bf16(z), wo_ref[layer], preferred_element_type=jnp.float32)
        y = y + bo_ref[layer]
        x = (x + y[:, :C]) * _INV_SQRT2
        skip = skip + y[:, C:]
        return x, skip

    # fori_loop over dilation cycles (dilations static inside the unrolled cycle) bounds
    # vreg live ranges and streams per-layer weights via dynamic leading-axis indexing.
    def cycle_body(cyc, carry):
        x, skip = carry
        for j, d in enumerate(dils):
            x, skip = layer_body(cyc * dilation_cycle + j, d, x, skip)
        return x, skip

    n_cycles = n_layers // dilation_cycle
    x, skip = lax.fori_loop(0, n_cycles, cycle_body,
                            (x0, jnp.zeros((T, C), jnp.float32)))
    for j in range(n_layers - n_cycles * dilation_cycle):   # static tail (empty for 20/4)
        x, skip = layer_body(n_cycles * dilation_cycle + j, dils[j], x, skip)

    # skip_sum / sqrt(n_layers) is folded into wcin; mel attention mask, then the 1x1
    # ConvTranspose (bias-free matmul) to the hidden width.
    xm = skip * mask_ref[0]
    o_ref[0] = jnp.dot(_bf16(xm), wcin_ref[...],
                       preferred_element_type=jnp.float32).astype(o_ref.dtype)


# --------------------------------------------------------------------------
# Kernel B: ConvNeXt blocks + conv_out (Conv3 -> GELU -> Conv3) + fused final permute
# --------------------------------------------------------------------------
def _convnext_out_kernel(x_ref, wdw_ref, bdw_ref, lnw_ref, lnb_ref,
                         w1_ref, b1_ref, w2_ref, b2_ref, gamma_ref,
                         o1w_ref, o1b_ref, o2wa_ref, o2wb_ref, o2b_ref,
                         o_ref, *, seq_len, n_layer, ksize, dilation):
    T = seq_len
    half = ksize // 2
    row = lax.broadcasted_iota(jnp.int32, (T, 1), 0)

    def block_body(i, x):
        res = x
        dw = wdw_ref[i]                              # (ksize, 1, H)
        # depthwise dilated Conv1d(H, H, ksize, dilation, groups=H): rolls + VPU FMAs
        acc = x * dw[half]
        for k in range(ksize):
            if k == half:
                continue
            acc = acc + _shifted(x, (k - half) * dilation, row) * dw[k]
        acc = acc + bdw_ref[i]
        # LayerNorm(eps=1e-6) over channels
        mean = jnp.mean(acc, axis=-1, keepdims=True)
        var = jnp.mean(jnp.square(acc - mean), axis=-1, keepdims=True)
        y = (acc - mean) * lax.rsqrt(var + 1e-6)
        y = y * lnw_ref[i] + lnb_ref[i]
        # pwconv1 -> GELU -> pwconv2 -> gamma -> residual (4H hidden never leaves VMEM)
        h = _gelu(jnp.dot(_bf16(y), w1_ref[i], preferred_element_type=jnp.float32)
                  + b1_ref[i])
        z = jnp.dot(_bf16(h), w2_ref[i], preferred_element_type=jnp.float32) + b2_ref[i]
        return res + gamma_ref[i] * z

    x = lax.fori_loop(0, n_layer, block_body, x_ref[0].astype(jnp.float32))

    # conv_out stage 1: Conv1d(H, bn, 3, 1, 1) -> GELU as one im2col matmul
    xcat = _bf16(jnp.concatenate([_shifted(x, -1, row), x, _shifted(x, 1, row)],
                                 axis=-1))
    h = _gelu(jnp.dot(xcat, o1w_ref[...], preferred_element_type=jnp.float32)
              + o1b_ref[...])

    # conv_out stage 2: Conv1d(bn, odim, 3, 1, 1) fused with
    #   x.view(B, odim, 2, T//2).permute(0, 3, 1, 2).flatten(2)
    # out[s, 2c+k] = y[k*T//2 + s, c] realised via lane-interleaved weight copies
    # (o2wa for the first time-half, o2wb for the second) -> lane-dense (2*odim) store.
    hcat = jnp.concatenate([_shifted(h, -1, row), h, _shifted(h, 1, row)], axis=-1)
    th = T // 2
    out = jnp.dot(_bf16(hcat[:th]), o2wa_ref[...], preferred_element_type=jnp.float32)
    out = out + jnp.dot(_bf16(hcat[th:]), o2wb_ref[...],
                        preferred_element_type=jnp.float32)
    o_ref[0] = (out + o2b_ref[...]).astype(o_ref.dtype)


# --------------------------------------------------------------------------
# pallas_call wrappers
# --------------------------------------------------------------------------
_CP = pltpu.CompilerParams(dimension_semantics=("parallel",),
                           vmem_limit_bytes=32 * 1024 * 1024)


def _row_spec(T, C):
    return pl.BlockSpec((1, T, C), lambda b: (b, 0, 0))


def _full_spec(a):
    nd = a.ndim
    # TODO(synk): pipeline_mode=pl.Buffered(1) would avoid double-buffering these
    # constant-index weight slabs (VMEM headroom on v7x); left at default for safety.
    return pl.BlockSpec(a.shape, lambda b, _n=nd: (0,) * _n)


def wavenet_front(mel_bf16, mask, p, *, dilation_cycle):
    B, T, M = mel_bf16.shape
    C = p["wn_in_w"].shape[1]
    H = p["conv_in_w"].shape[1]
    L = p["wd"].shape[0]
    weights = (p["wn_in_w"], p["wn_in_b"], p["wd"], p["bd"], p["wo"], p["bo"],
               p["conv_in_w"])
    return pl.pallas_call(
        partial(_wavenet_front_kernel, seq_len=T, channels=C, n_layers=L,
                dilation_cycle=dilation_cycle),
        out_shape=jax.ShapeDtypeStruct((B, T, H), jnp.bfloat16),
        grid=(B,),
        in_specs=[_row_spec(T, M), _row_spec(T, 1)] + [_full_spec(w) for w in weights],
        out_specs=_row_spec(T, H),
        compiler_params=_CP,
    )(mel_bf16, mask, *weights)


def convnext_out(x, p, *, ksize, dilation):
    B, T, H = x.shape
    two_odim = p["out2_wa"].shape[-1]
    n_layer = p["wdw"].shape[0]
    weights = (p["wdw"], p["bdw"], p["lnw"], p["lnb"], p["w1"], p["b1"], p["w2"],
               p["b2"], p["gamma"], p["out1_w"], p["out1_b"], p["out2_wa"],
               p["out2_wb"], p["out2_b"])
    return pl.pallas_call(
        partial(_convnext_out_kernel, seq_len=T, n_layer=n_layer, ksize=ksize,
                dilation=dilation),
        out_shape=jax.ShapeDtypeStruct((B, T // 2, two_odim), jnp.float32),
        grid=(B,),
        in_specs=[_row_spec(T, H)] + [_full_spec(w) for w in weights],
        out_specs=pl.BlockSpec((1, T // 2, two_odim), lambda b: (b, 0, 0)),
        compiler_params=_CP,
    )(x, *weights)


# --------------------------------------------------------------------------
# parameters
# --------------------------------------------------------------------------
def _normal(key, shape, scale=0.02):
    return scale * jax.random.normal(key, shape, jnp.float32)


def init_params(key, *, idim, odim, n_layer, bn_dim, hidden, kernel,
                mel_channels=100, residual_layers=20):
    """f32, channels-last matmul-layout parameters mirroring the PyTorch module."""
    keys = iter(jax.random.split(key, 64))
    p = {}
    # WaveNet: Conv1d(100, idim, 1); 20x [Conv1d(C,2C,3,dil), Conv1d(C,2C,1)] (stacked)
    p["wn_in_w"] = _normal(next(keys), (mel_channels, idim))
    p["wn_in_b"] = _normal(next(keys), (1, idim))
    p["wd"] = _normal(next(keys), (residual_layers, 3, idim, 2 * idim))   # per-tap (in,out)
    p["bd"] = _normal(next(keys), (residual_layers, 1, 2 * idim))
    p["wo"] = _normal(next(keys), (residual_layers, idim, 2 * idim))
    p["bo"] = _normal(next(keys), (residual_layers, 1, 2 * idim))
    # ConvTranspose1d(idim, hidden, 1, bias=False): 1x1 matmul weight
    p["conv_in_w"] = _normal(next(keys), (idim, hidden))
    # n_layer ConvNeXt blocks (stacked)
    p["wdw"] = _normal(next(keys), (n_layer, kernel, 1, hidden))          # depthwise conv
    p["bdw"] = _normal(next(keys), (n_layer, 1, hidden))
    p["lnw"] = jnp.ones((n_layer, 1, hidden), jnp.float32)
    p["lnb"] = jnp.zeros((n_layer, 1, hidden), jnp.float32)
    p["w1"] = _normal(next(keys), (n_layer, hidden, hidden * 4))
    p["b1"] = _normal(next(keys), (n_layer, 1, hidden * 4))
    p["w2"] = _normal(next(keys), (n_layer, hidden * 4, hidden))
    p["b2"] = _normal(next(keys), (n_layer, 1, hidden))
    p["gamma"] = jnp.full((n_layer, 1, hidden), 1e-6, jnp.float32)
    # conv_out: Conv1d(hidden, bn, 3,1,1) -> GELU -> Conv1d(bn, odim, 3,1,1)
    p["out1_w"] = _normal(next(keys), (3, hidden, bn_dim))
    p["out1_b"] = _normal(next(keys), (1, bn_dim))
    p["out2_w"] = _normal(next(keys), (3, bn_dim, odim))
    p["out2_b"] = _normal(next(keys), (1, odim))
    return p


def pack_params(p):
    """Kernel-ready params: bf16 MXU weights, im2col layouts, skip-scale folded into
    conv_in, and lane-interleaved final conv weights fusing the output view/permute."""
    L, _, C, twoC = p["wd"].shape
    hidden = p["conv_in_w"].shape[1]
    bn = p["out1_w"].shape[-1]
    odim = p["out2_w"].shape[-1]
    q = dict(p)
    q["wn_in_w"] = _bf16(p["wn_in_w"])
    q["wd"] = _bf16(p["wd"].reshape(L, 3 * C, twoC))           # im2col: taps stacked on K
    q["wo"] = _bf16(p["wo"])
    q["conv_in_w"] = _bf16(p["conv_in_w"] / math.sqrt(L))      # fold 1/sqrt(n_blocks)
    q["w1"] = _bf16(p["w1"])
    q["w2"] = _bf16(p["w2"])
    q["out1_w"] = _bf16(p["out1_w"].reshape(3 * hidden, bn))   # im2col
    # final conv weight, lane-interleaved: column 2c+0 <- first time-half, 2c+1 <- second
    w2 = p["out2_w"].reshape(3 * bn, odim)
    q["out2_wa"] = _bf16(jnp.zeros((3 * bn, 2 * odim), jnp.float32).at[:, 0::2].set(w2))
    q["out2_wb"] = _bf16(jnp.zeros((3 * bn, 2 * odim), jnp.float32).at[:, 1::2].set(w2))
    b2 = p["out2_b"]
    q["out2_b"] = (jnp.zeros((1, 2 * odim), jnp.float32)
                   .at[:, 0::2].set(b2).at[:, 1::2].set(b2))
    del q["out2_w"]
    return q


# --------------------------------------------------------------------------
# forward
# --------------------------------------------------------------------------
def dvae_encoder_forward(params, audio_mel_specs, audio_attention_mask,
                         *, kernel=7, dilation=2, dilation_cycle=4):
    # mel_attention_mask = mask.unsqueeze(-1).repeat(1,1,2).flatten(1)
    mel_mask = jnp.repeat(audio_attention_mask.astype(jnp.float32), 2, axis=1)[:, :, None]
    mel = audio_mel_specs.astype(jnp.bfloat16)        # halve the largest HBM->VMEM DMA
    x = wavenet_front(mel, mel_mask, params, dilation_cycle=dilation_cycle)
    # kernel B writes (B, T//2, 2*odim) directly: the final view/permute is fused.
    return convnext_out(x, params, ksize=kernel, dilation=dilation)


# --------------------------------------------------------------------------
# main
# --------------------------------------------------------------------------
if __name__ == "__main__":
    B, S = 2, 8
    T = 2 * S                      # mel frames = 2 * attention-mask length
    idim, odim = 32, 16
    n_layer, bn_dim, hidden = 2, 16, 64
    kernel_size, dil = 7, 2

    root = jax.random.PRNGKey(0)
    kp, kmel = jax.random.split(root)
    raw = init_params(kp, idim=idim, odim=odim, n_layer=n_layer, bn_dim=bn_dim,
                      hidden=hidden, kernel=kernel_size)
    params = pack_params(raw)
    audio_mel_specs = jax.random.normal(kmel, (B, T, 100), jnp.float32)
    audio_attention_mask = jnp.ones((B, S), jnp.float32).at[1, 6:].set(0.0)

    fwd = jax.jit(partial(dvae_encoder_forward, kernel=kernel_size, dilation=dil))
    out = fwd(params, audio_mel_specs, audio_attention_mask)
    jax.block_until_ready(out)
    assert out.shape == (B, S, 2 * odim), out.shape
    assert bool(jnp.all(jnp.isfinite(out)))
    print("KERNEL_OK")
</pallas_src>

<mosaic_0001>
module attributes {stable_mosaic.version = 11 : i64} {
  func.func @_wavenet_front_kernel(%arg0: i32, %arg1: memref<1x16x100xbf16, #tpu.memory_space<vmem>>, %arg2: memref<1x16x1xf32, #tpu.memory_space<vmem>>, %arg3: memref<100x32xbf16, #tpu.memory_space<vmem>>, %arg4: memref<1x32xf32, #tpu.memory_space<vmem>>, %arg5: memref<20x96x64xbf16, #tpu.memory_space<vmem>>, %arg6: memref<20x1x64xf32, #tpu.memory_space<vmem>>, %arg7: memref<20x32x64xbf16, #tpu.memory_space<vmem>>, %arg8: memref<20x1x64xf32, #tpu.memory_space<vmem>>, %arg9: memref<32x64xbf16, #tpu.memory_space<vmem>>, %arg10: memref<1x16x64xbf16, #tpu.memory_space<vmem>>) attributes {dimension_semantics = [#tpu.dimension_semantics<parallel>], iteration_bounds = array<i64: 2>, scalar_prefetch = 0 : i64, scratch_operands = 0 : i64, tpu.core_type = #tpu.core_type<tc>, window_params = [{transform_indices = @transform_0, window_bounds = array<i64: 1, 16, 100>}, {transform_indices = @transform_1, window_bounds = array<i64: 1, 16, 1>}, {pipeline_mode = #tpu.pipeline_mode<synchronous>, transform_indices = @transform_2, window_bounds = array<i64: 100, 32>}, {pipeline_mode = #tpu.pipeline_mode<synchronous>, transform_indices = @transform_3, window_bounds = array<i64: 1, 32>}, {pipeline_mode = #tpu.pipeline_mode<synchronous>, transform_indices = @transform_4, window_bounds = array<i64: 20, 96, 64>}, {pipeline_mode = #tpu.pipeline_mode<synchronous>, transform_indices = @transform_5, window_bounds = array<i64: 20, 1, 64>}, {pipeline_mode = #tpu.pipeline_mode<synchronous>, transform_indices = @transform_6, window_bounds = array<i64: 20, 32, 64>}, {pipeline_mode = #tpu.pipeline_mode<synchronous>, transform_indices = @transform_7, window_bounds = array<i64: 20, 1, 64>}, {pipeline_mode = #tpu.pipeline_mode<synchronous>, transform_indices = @transform_8, window_bounds = array<i64: 32, 64>}, {transform_indices = @transform_9, window_bounds = array<i64: 1, 16, 64>}]} {
    %0 = tpu.iota {dimensions = array<i32: 0>} : vector<16x1xi32>
    %c0 = arith.constant 0 : index
    %c0_0 = arith.constant 0 : index
    %c0_1 = arith.constant 0 : index
    %1 = vector.load %arg1[%c0, %c0_0, %c0_1] : memref<1x16x100xbf16, #tpu.memory_space<vmem>>, vector<1x16x100xbf16>
    %2 = vector.shape_cast %1 : vector<1x16x100xbf16> to vector<16x100xbf16>
    %c0_2 = arith.constant 0 : index
    %c0_3 = arith.constant 0 : index
    %3 = vector.load %arg3[%c0_2, %c0_3] : memref<100x32xbf16, #tpu.memory_space<vmem>>, vector<100x32xbf16>
    %cst = arith.constant dense<0.000000e+00> : vector<16x32xf32>
    %4 = tpu.matmul %2, %3, %cst {dimension_numbers = #tpu.dot_dimension_numbers<[1], [0], [0], [1], [0, 0, 1, 1], [], []>} : vector<16x100xbf16>, vector<100x32xbf16>, vector<16x32xf32> -> vector<16x32xf32>
    %c0_4 = arith.constant 0 : index
    %c0_5 = arith.constant 0 : index
    %5 = vector.load %arg4[%c0_4, %c0_5] : memref<1x32xf32, #tpu.memory_space<vmem>>, vector<1x32xf32>
    %6 = vector.broadcast %5 : vector<1x32xf32> to vector<16x32xf32>
    %7 = arith.addf %4, %6 : vector<16x32xf32>
    %8 = arith.negf %7 : vector<16x32xf32>
    %9 = math.exp %8 : vector<16x32xf32>
    %cst_6 = arith.constant 1.000000e+00 : f32
    %10 = vector.broadcast %cst_6 : f32 to vector<16x32xf32>
    %11 = arith.addf %10, %9 : vector<16x32xf32>
    %12 = arith.divf %10, %11 : vector<16x32xf32>
    %13 = arith.mulf %7, %12 : vector<16x32xf32>
    %cst_7 = arith.constant 0.000000e+00 : f32
    %14 = vector.broadcast %cst_7 : f32 to vector<16x32xf32>
    %c0_i32 = arith.constant 0 : i32
    %c5_i32 = arith.constant 5 : i32
    %15 = arith.addi %c0_i32, %c5_i32 : i32
    %c1_i32 = arith.constant 1 : i32
    %16:2 = scf.for %arg11 = %c0_i32 to %15 step %c1_i32 iter_args(%arg12 = %13, %arg13 = %14) -> (vector<16x32xf32>, vector<16x32xf32>)  : i32 {
      %c4_i32 = arith.constant 4 : i32
      %28 = arith.muli %arg11, %c4_i32 : i32
      %c0_i32_18 = arith.constant 0 : i32
      %29 = arith.addi %28, %c0_i32_18 : i32
      %c1_i32_19 = arith.constant 1 : i32
      %30 = vector.broadcast %c1_i32_19 : i32 to vector<16x1xi32>
      %31 = arith.cmpi sge, %0, %30 : vector<16x1xi32>
      %c1_i32_20 = arith.constant 1 : i32
      %32 = tpu.dynamic_rotate %arg12 by %c1_i32_20 dim 0 : vector<16x32xf32>, i32 -> vector<16x32xf32>
      %cst_21 = arith.constant 0.000000e+00 : f32
      %33 = vector.shape_cast %31 : vector<16x1xi1> to vector<16x1xi1>
      %34 = vector.broadcast %33 : vector<16x1xi1> to vector<16x32xi1>
      %35 = vector.broadcast %cst_21 : f32 to vector<16x32xf32>
      %36 = arith.select %34, %32, %35 : vector<16x32xi1>, vector<16x32xf32>
      %c15_i32 = arith.constant 15 : i32
      %37 = vector.broadcast %c15_i32 : i32 to vector<16x1xi32>
      %38 = arith.cmpi slt, %0, %37 : vector<16x1xi32>
      %c15_i32_22 = arith.constant 15 : i32
      %39 = tpu.dynamic_rotate %arg12 by %c15_i32_22 dim 0 : vector<16x32xf32>, i32 -> vector<16x32xf32>
      %cst_23 = arith.constant 0.000000e+00 : f32
      %40 = vector.shape_cast %38 : vector<16x1xi1> to vector<16x1xi1>
      %41 = vector.broadcast %40 : vector<16x1xi1> to vector<16x32xi1>
      %42 = vector.broadcast %cst_23 : f32 to vector<16x32xf32>
      %43 = arith.select %41, %39, %42 : vector<16x32xi1>, vector<16x32xf32>
      %44 = tpu.concatenate %36, %arg12, %43 in 1 : vector<16x32xf32>, vector<16x32xf32>, vector<16x32xf32> -> vector<16x96xf32>
      %45 = arith.truncf %44 : vector<16x96xf32> to vector<16x96xbf16>
      %46 = arith.index_cast %29 : i32 to index
      %c0_24 = arith.constant 0 : index
      %c0_25 = arith.constant 0 : index
      %47 = vector.load %arg5[%46, %c0_24, %c0_25] : memref<20x96x64xbf16, #tpu.memory_space<vmem>>, vector<1x96x64xbf16>
      %48 = vector.shape_cast %47 : vector<1x96x64xbf16> to vector<96x64xbf16>
      %cst_26 = arith.constant dense<0.000000e+00> : vector<16x64xf32>
      %49 = tpu.matmul %45, %48, %cst_26 {dimension_numbers = #tpu.dot_dimension_numbers<[1], [0], [0], [1], [0, 0, 1, 1], [], []>} : vector<16x96xbf16>, vector<96x64xbf16>, vector<16x64xf32> -> vector<16x64xf32>
      %50 = arith.index_cast %29 : i32 to index
      %c0_27 = arith.constant 0 : index
      %c0_28 = arith.constant 0 : index
      %51 = vector.load %arg6[%50, %c0_27, %c0_28] : memref<20x1x64xf32, #tpu.memory_space<vmem>>, vector<1x1x64xf32>
      %52 = vector.shape_cast %51 : vector<1x1x64xf32> to vector<1x64xf32>
      %53 = vector.broadcast %52 : vector<1x64xf32> to vector<16x64xf32>
      %54 = arith.addf %49, %53 : vector<16x64xf32>
      %55 = vector.extract_strided_slice %54 {offsets = [0, 0], sizes = [16, 32], strides = [1, 1]} : vector<16x64xf32> to vector<16x32xf32>
      %56 = arith.negf %55 : vector<16x32xf32>
      %57 = math.exp %56 : vector<16x32xf32>
      %cst_29 = arith.constant 1.000000e+00 : f32
      %58 = vector.broadcast %cst_29 : f32 to vector<16x32xf32>
      %59 = arith.addf %58, %57 : vector<16x32xf32>
      %60 = arith.divf %58, %59 : vector<16x32xf32>
      %61 = vector.extract_strided_slice %54 {offsets = [0, 32], sizes = [16, 32], strides = [1, 1]} : vector<16x64xf32> to vector<16x32xf32>
      %62 = math.tanh %61 : vector<16x32xf32>
      %63 = arith.mulf %60, %62 : vector<16x32xf32>
      %64 = arith.truncf %63 : vector<16x32xf32> to vector<16x32xbf16>
      %65 = arith.index_cast %29 : i32 to index
      %c0_30 = arith.constant 0 : index
      %c0_31 = arith.constant 0 : index
      %66 = vector.load %arg7[%65, %c0_30, %c0_31] : memref<20x32x64xbf16, #tpu.memory_space<vmem>>, vector<1x32x64xbf16>
      %67 = vector.shape_cast %66 : vector<1x32x64xbf16> to vector<32x64xbf16>
      %cst_32 = arith.constant dense<0.000000e+00> : vector<16x64xf32>
      %68 = tpu.matmul %64, %67, %cst_32 {dimension_numbers = #tpu.dot_dimension_numbers<[1], [0], [0], [1], [0, 0, 1, 1], [], []>} : vector<16x32xbf16>, vector<32x64xbf16>, vector<16x64xf32> -> vector<16x64xf32>
      %69 = arith.index_cast %29 : i32 to index
      %c0_33 = arith.constant 0 : index
      %c0_34 = arith.constant 0 : index
      %70 = vector.load %arg8[%69, %c0_33, %c0_34] : memref<20x1x64xf32, #tpu.memory_space<vmem>>, vector<1x1x64xf32>
      %71 = vector.shape_cast %70 : vector<1x1x64xf32> to vector<1x64xf32>
      %72 = vector.broadcast %71 : vector<1x64xf32> to vector<16x64xf32>
      %73 = arith.addf %68, %72 : vector<16x64xf32>
      %74 = vector.extract_strided_slice %73 {offsets = [0, 0], sizes = [16, 32], strides = [1, 1]} : vector<16x64xf32> to vector<16x32xf32>
      %75 = arith.addf %arg12, %74 : vector<16x32xf32>
      %cst_35 = arith.constant 0.707106769 : f32
      %76 = vector.broadcast %cst_35 : f32 to vector<16x32xf32>
      %77 = arith.mulf %75, %76 : vector<16x32xf32>
      %78 = vector.extract_strided_slice %73 {offsets = [0, 32], sizes = [16, 32], strides = [1, 1]} : vector<16x64xf32> to vector<16x32xf32>
      %79 = arith.addf %arg13, %78 : vector<16x32xf32>
      %c4_i32_36 = arith.constant 4 : i32
      %80 = arith.muli %arg11, %c4_i32_36 : i32
      %c1_i32_37 = arith.constant 1 : i32
      %81 = arith.addi %80, %c1_i32_37 : i32
      %c2_i32 = arith.constant 2 : i32
      %82 = vector.broadcast %c2_i32 : i32 to vector<16x1xi32>
      %83 = arith.cmpi sge, %0, %82 : vector<16x1xi32>
      %c2_i32_38 = arith.constant 2 : i32
      %84 = tpu.dynamic_rotate %77 by %c2_i32_38 dim 0 : vector<16x32xf32>, i32 -> vector<16x32xf32>
      %cst_39 = arith.constant 0.000000e+00 : f32
      %85 = vector.shape_cast %83 : vector<16x1xi1> to vector<16x1xi1>
      %86 = vector.broadcast %85 : vector<16x1xi1> to vector<16x32xi1>
      %87 = vector.broadcast %cst_39 : f32 to vector<16x32xf32>
      %88 = arith.select %86, %84, %87 : vector<16x32xi1>, vector<16x32xf32>
      %c14_i32 = arith.constant 14 : i32
      %89 = vector.broadcast %c14_i32 : i32 to vector<16x1xi32>
      %90 = arith.cmpi slt, %0, %89 : vector<16x1xi32>
      %c14_i32_40 = arith.constant 14 : i32
      %91 = tpu.dynamic_rotate %77 by %c14_i32_40 dim 0 : vector<16x32xf32>, i32 -> vector<16x32xf32>
      %cst_41 = arith.constant 0.000000e+00 : f32
      %92 = vector.shape_cast %90 : vector<16x1xi1> to vector<16x1xi1>
      %93 = vector.broadcast %92 : vector<16x1xi1> to vector<16x32xi1>
      %94 = vector.broadcast %cst_41 : f32 to vector<16x32xf32>
      %95 = arith.select %93, %91, %94 : vector<16x32xi1>, vector<16x32xf32>
      %96 = tpu.concatenate %88, %77, %95 in 1 : vector<16x32xf32>, vector<16x32xf32>, vector<16x32xf32> -> vector<16x96xf32>
      %97 = arith.truncf %96 : vector<16x96xf32> to vector<16x96xbf16>
      %98 = arith.index_cast %81 : i32 to index
      %c0_42 = arith.constant 0 : index
      %c0_43 = arith.constant 0 : index
      %99 = vector.load %arg5[%98, %c0_42, %c0_43] : memref<20x96x64xbf16, #tpu.memory_space<vmem>>, vector<1x96x64xbf16>
      %100 = vector.shape_cast %99 : vector<1x96x64xbf16> to vector<96x64xbf16>
      %cst_44 = arith.constant dense<0.000000e+00> : vector<16x64xf32>
      %101 = tpu.matmul %97, %100, %cst_44 {dimension_numbers = #tpu.dot_dimension_numbers<[1], [0], [0], [1], [0, 0, 1, 1], [], []>} : vector<16x96xbf16>, vector<96x64xbf16>, vector<16x64xf32> -> vector<16x64xf32>
      %102 = arith.index_cast %81 : i32 to index
      %c0_45 = arith.constant 0 : index
      %c0_46 = arith.constant 0 : index
      %103 = vector.load %arg6[%102, %c0_45, %c0_46] : memref<20x1x64xf32, #tpu.memory_space<vmem>>, vector<1x1x64xf32>
      %104 = vector.shape_cast %103 : vector<1x1x64xf32> to vector<1x64xf32>
      %105 = vector.broadcast %104 : vector<1x64xf32> to vector<16x64xf32>
      %106 = arith.addf %101, %105 : vector<16x64xf32>
      %107 = vector.extract_strided_slice %106 {offsets = [0, 0], sizes = [16, 32], strides = [1, 1]} : vector<16x64xf32> to vector<16x32xf32>
      %108 = arith.negf %107 : vector<16x32xf32>
      %109 = math.exp %108 : vector<16x32xf32>
      %cst_47 = arith.constant 1.000000e+00 : f32
      %110 = vector.broadcast %cst_47 : f32 to vector<16x32xf32>
      %111 = arith.addf %110, %109 : vector<16x32xf32>
      %112 = arith.divf %110, %111 : vector<16x32xf32>
      %113 = vector.extract_strided_slice %106 {offsets = [0, 32], sizes = [16, 32], strides = [1, 1]} : vector<16x64xf32> to vector<16x32xf32>
      %114 = math.tanh %113 : vector<16x32xf32>
      %115 = arith.mulf %112, %114 : vector<16x32xf32>
      %116 = arith.truncf %115 : vector<16x32xf32> to vector<16x32xbf16>
      %117 = arith.index_cast %81 : i32 to index
      %c0_48 = arith.constant 0 : index
      %c0_49 = arith.constant 0 : index
      %118 = vector.load %arg7[%117, %c0_48, %c0_49] : memref<20x32x64xbf16, #tpu.memory_space<vmem>>, vector<1x32x64xbf16>
      %119 = vector.shape_cast %118 : vector<1x32x64xbf16> to vector<32x64xbf16>
      %cst_50 = arith.constant dense<0.000000e+00> : vector<16x64xf32>
      %120 = tpu.matmul %116, %119, %cst_50 {dimension_numbers = #tpu.dot_dimension_numbers<[1], [0], [0], [1], [0, 0, 1, 1], [], []>} : vector<16x32xbf16>, vector<32x64xbf16>, vector<16x64xf32> -> vector<16x64xf32>
      %121 = arith.index_cast %81 : i32 to index
      %c0_51 = arith.constant 0 : index
      %c0_52 = arith.constant 0 : index
      %122 = vector.load %arg8[%121, %c0_51, %c0_52] : memref<20x1x64xf32, #tpu.memory_space<vmem>>, vector<1x1x64xf32>
      %123 = vector.shape_cast %122 : vector<1x1x64xf32> to vector<1x64xf32>
      %124 = vector.broadcast %123 : vector<1x64xf32> to vector<16x64xf32>
      %125 = arith.addf %120, %124 : vector<16x64xf32>
      %126 = vector.extract_strided_slice %125 {offsets = [0, 0], sizes = [16, 32], strides = [1, 1]} : vector<16x64xf32> to vector<16x32xf32>
      %127 = arith.addf %77, %126 : vector<16x32xf32>
      %cst_53 = arith.constant 0.707106769 : f32
      %128 = vector.broadcast %cst_53 : f32 to vector<16x32xf32>
      %129 = arith.mulf %127, %128 : vector<16x32xf32>
      %130 = vector.extract_strided_slice %125 {offsets = [0, 32], sizes = [16, 32], strides = [1, 1]} : vector<16x64xf32> to vector<16x32xf32>
      %131 = arith.addf %79, %130 : vector<16x32xf32>
      %c4_i32_54 = arith.constant 4 : i32
      %132 = arith.muli %arg11, %c4_i32_54 : i32
      %c2_i32_55 = arith.constant 2 : i32
      %133 = arith.addi %132, %c2_i32_55 : i32
      %c4_i32_56 = arith.constant 4 : i32
      %134 = vector.broadcast %c4_i32_56 : i32 to vector<16x1xi32>
      %135 = arith.cmpi sge, %0, %134 : vector<16x1xi32>
      %c4_i32_57 = arith.constant 4 : i32
      %136 = tpu.dynamic_rotate %129 by %c4_i32_57 dim 0 : vector<16x32xf32>, i32 -> vector<16x32xf32>
      %cst_58 = arith.constant 0.000000e+00 : f32
      %137 = vector.shape_cast %135 : vector<16x1xi1> to vector<16x1xi1>
      %138 = vector.broadcast %137 : vector<16x1xi1> to vector<16x32xi1>
      %139 = vector.broadcast %cst_58 : f32 to vector<16x32xf32>
      %140 = arith.select %138, %136, %139 : vector<16x32xi1>, vector<16x32xf32>
      %c12_i32 = arith.constant 12 : i32
      %141 = vector.broadcast %c12_i32 : i32 to vector<16x1xi32>
      %142 = arith.cmpi slt, %0, %141 : vector<16x1xi32>
      %c12_i32_59 = arith.constant 12 : i32
      %143 = tpu.dynamic_rotate %129 by %c12_i32_59 dim 0 : vector<16x32xf32>, i32 -> vector<16x32xf32>
      %cst_60 = arith.constant 0.000000e+00 : f32
      %144 = vector.shape_cast %142 : vector<16x1xi1> to vector<16x1xi1>
      %145 = vector.broadcast %144 : vector<16x1xi1> to vector<16x32xi1>
      %146 = vector.broadcast %cst_60 : f32 to vector<16x32xf32>
      %147 = arith.select %145, %143, %146 : vector<16x32xi1>, vector<16x32xf32>
      %148 = tpu.concatenate %140, %129, %147 in 1 : vector<16x32xf32>, vector<16x32xf32>, vector<16x32xf32> -> vector<16x96xf32>
      %149 = arith.truncf %148 : vector<16x96xf32> to vector<16x96xbf16>
      %150 = arith.index_cast %133 : i32 to index
      %c0_61 = arith.constant 0 : index
      %c0_62 = arith.constant 0 : index
      %151 = vector.load %arg5[%150, %c0_61, %c0_62] : memref<20x96x64xbf16, #tpu.memory_space<vmem>>, vector<1x96x64xbf16>
      %152 = vector.shape_cast %151 : vector<1x96x64xbf16> to vector<96x64xbf16>
      %cst_63 = arith.constant dense<0.000000e+00> : vector<16x64xf32>
      %153 = tpu.matmul %149, %152, %cst_63 {dimension_numbers = #tpu.dot_dimension_numbers<[1], [0], [0], [1], [0, 0, 1, 1], [], []>} : vector<16x96xbf16>, vector<96x64xbf16>, vector<16x64xf32> -> vector<16x64xf32>
      %154 = arith.index_cast %133 : i32 to index
      %c0_64 = arith.constant 0 : index
      %c0_65 = arith.constant 0 : index
      %155 = vector.load %arg6[%154, %c0_64, %c0_65] : memref<20x1x64xf32, #tpu.memory_space<vmem>>, vector<1x1x64xf32>
      %156 = vector.shape_cast %155 : vector<1x1x64xf32> to vector<1x64xf32>
      %157 = vector.broadcast %156 : vector<1x64xf32> to vector<16x64xf32>
      %158 = arith.addf %153, %157 : vector<16x64xf32>
      %159 = vector.extract_strided_slice %158 {offsets = [0, 0], sizes = [16, 32], strides = [1, 1]} : vector<16x64xf32> to vector<16x32xf32>
      %160 = arith.negf %159 : vector<16x32xf32>
      %161 = math.exp %160 : vector<16x32xf32>
      %cst_66 = arith.constant 1.000000e+00 : f32
      %162 = vector.broadcast %cst_66 : f32 to vector<16x32xf32>
      %163 = arith.addf %162, %161 : vector<16x32xf32>
      %164 = arith.divf %162, %163 : vector<16x32xf32>
      %165 = vector.extract_strided_slice %158 {offsets = [0, 32], sizes = [16, 32], strides = [1, 1]} : vector<16x64xf32> to vector<16x32xf32>
      %166 = math.tanh %165 : vector<16x32xf32>
      %167 = arith.mulf %164, %166 : vector<16x32xf32>
      %168 = arith.truncf %167 : vector<16x32xf32> to vector<16x32xbf16>
      %169 = arith.index_cast %133 : i32 to index
      %c0_67 = arith.constant 0 : index
      %c0_68 = arith.constant 0 : index
      %170 = vector.load %arg7[%169, %c0_67, %c0_68] : memref<20x32x64xbf16, #tpu.memory_space<vmem>>, vector<1x32x64xbf16>
      %171 = vector.shape_cast %170 : vector<1x32x64xbf16> to vector<32x64xbf16>
      %cst_69 = arith.constant dense<0.000000e+00> : vector<16x64xf32>
      %172 = tpu.matmul %168, %171, %cst_69 {dimension_numbers = #tpu.dot_dimension_numbers<[1], [0], [0], [1], [0, 0, 1, 1], [], []>} : vector<16x32xbf16>, vector<32x64xbf16>, vector<16x64xf32> -> vector<16x64xf32>
      %173 = arith.index_cast %133 : i32 to index
      %c0_70 = arith.constant 0 : index
      %c0_71 = arith.constant 0 : index
      %174 = vector.load %arg8[%173, %c0_70, %c0_71] : memref<20x1x64xf32, #tpu.memory_space<vmem>>, vector<1x1x64xf32>
      %175 = vector.shape_cast %174 : vector<1x1x64xf32> to vector<1x64xf32>
      %176 = vector.broadcast %175 : vector<1x64xf32> to vector<16x64xf32>
      %177 = arith.addf %172, %176 : vector<16x64xf32>
      %178 = vector.extract_strided_slice %177 {offsets = [0, 0], sizes = [16, 32], strides = [1, 1]} : vector<16x64xf32> to vector<16x32xf32>
      %179 = arith.addf %129, %178 : vector<16x32xf32>
      %cst_72 = arith.constant 0.707106769 : f32
      %180 = vector.broadcast %cst_72 : f32 to vector<16x32xf32>
      %181 = arith.mulf %179, %180 : vector<16x32xf32>
      %182 = vector.extract_strided_slice %177 {offsets = [0, 32], sizes = [16, 32], strides = [1, 1]} : vector<16x64xf32> to vector<16x32xf32>
      %183 = arith.addf %131, %182 : vector<16x32xf32>
      %c4_i32_73 = arith.constant 4 : i32
      %184 = arith.muli %arg11, %c4_i32_73 : i32
      %c3_i32 = arith.constant 3 : i32
      %185 = arith.addi %184, %c3_i32 : i32
      %c8_i32 = arith.constant 8 : i32
      %186 = vector.broadcast %c8_i32 : i32 to vector<16x1xi32>
      %187 = arith.cmpi sge, %0, %186 : vector<16x1xi32>
      %c8_i32_74 = arith.constant 8 : i32
      %188 = tpu.dynamic_rotate %181 by %c8_i32_74 dim 0 : vector<16x32xf32>, i32 -> vector<16x32xf32>
      %cst_75 = arith.constant 0.000000e+00 : f32
      %189 = vector.shape_cast %187 : vector<16x1xi1> to vector<16x1xi1>
      %190 = vector.broadcast %189 : vector<16x1xi1> to vector<16x32xi1>
      %191 = vector.broadcast %cst_75 : f32 to vector<16x32xf32>
      %192 = arith.select %190, %188, %191 : vector<16x32xi1>, vector<16x32xf32>
      %c8_i32_76 = arith.constant 8 : i32
      %193 = vector.broadcast %c8_i32_76 : i32 to vector<16x1xi32>
      %194 = arith.cmpi slt, %0, %193 : vector<16x1xi32>
      %c8_i32_77 = arith.constant 8 : i32
      %195 = tpu.dynamic_rotate %181 by %c8_i32_77 dim 0 : vector<16x32xf32>, i32 -> vector<16x32xf32>
      %cst_78 = arith.constant 0.000000e+00 : f32
      %196 = vector.shape_cast %194 : vector<16x1xi1> to vector<16x1xi1>
      %197 = vector.broadcast %196 : vector<16x1xi1> to vector<16x32xi1>
      %198 = vector.broadcast %cst_78 : f32 to vector<16x32xf32>
      %199 = arith.select %197, %195, %198 : vector<16x32xi1>, vector<16x32xf32>
      %200 = tpu.concatenate %192, %181, %199 in 1 : vector<16x32xf32>, vector<16x32xf32>, vector<16x32xf32> -> vector<16x96xf32>
      %201 = arith.truncf %200 : vector<16x96xf32> to vector<16x96xbf16>
      %202 = arith.index_cast %185 : i32 to index
      %c0_79 = arith.constant 0 : index
      %c0_80 = arith.constant 0 : index
      %203 = vector.load %arg5[%202, %c0_79, %c0_80] : memref<20x96x64xbf16, #tpu.memory_space<vmem>>, vector<1x96x64xbf16>
      %204 = vector.shape_cast %203 : vector<1x96x64xbf16> to vector<96x64xbf16>
      %cst_81 = arith.constant dense<0.000000e+00> : vector<16x64xf32>
      %205 = tpu.matmul %201, %204, %cst_81 {dimension_numbers = #tpu.dot_dimension_numbers<[1], [0], [0], [1], [0, 0, 1, 1], [], []>} : vector<16x96xbf16>, vector<96x64xbf16>, vector<16x64xf32> -> vector<16x64xf32>
      %206 = arith.index_cast %185 : i32 to index
      %c0_82 = arith.constant 0 : index
      %c0_83 = arith.constant 0 : index
      %207 = vector.load %arg6[%206, %c0_82, %c0_83] : memref<20x1x64xf32, #tpu.memory_space<vmem>>, vector<1x1x64xf32>
      %208 = vector.shape_cast %207 : vector<1x1x64xf32> to vector<1x64xf32>
      %209 = vector.broadcast %208 : vector<1x64xf32> to vector<16x64xf32>
      %210 = arith.addf %205, %209 : vector<16x64xf32>
      %211 = vector.extract_strided_slice %210 {offsets = [0, 0], sizes = [16, 32], strides = [1, 1]} : vector<16x64xf32> to vector<16x32xf32>
      %212 = arith.negf %211 : vector<16x32xf32>
      %213 = math.exp %212 : vector<16x32xf32>
      %cst_84 = arith.constant 1.000000e+00 : f32
      %214 = vector.broadcast %cst_84 : f32 to vector<16x32xf32>
      %215 = arith.addf %214, %213 : vector<16x32xf32>
      %216 = arith.divf %214, %215 : vector<16x32xf32>
      %217 = vector.extract_strided_slice %210 {offsets = [0, 32], sizes = [16, 32], strides = [1, 1]} : vector<16x64xf32> to vector<16x32xf32>
      %218 = math.tanh %217 : vector<16x32xf32>
      %219 = arith.mulf %216, %218 : vector<16x32xf32>
      %220 = arith.truncf %219 : vector<16x32xf32> to vector<16x32xbf16>
      %221 = arith.index_cast %185 : i32 to index
      %c0_85 = arith.constant 0 : index
      %c0_86 = arith.constant 0 : index
      %222 = vector.load %arg7[%221, %c0_85, %c0_86] : memref<20x32x64xbf16, #tpu.memory_space<vmem>>, vector<1x32x64xbf16>
      %223 = vector.shape_cast %222 : vector<1x32x64xbf16> to vector<32x64xbf16>
      %cst_87 = arith.constant dense<0.000000e+00> : vector<16x64xf32>
      %224 = tpu.matmul %220, %223, %cst_87 {dimension_numbers = #tpu.dot_dimension_numbers<[1], [0], [0], [1], [0, 0, 1, 1], [], []>} : vector<16x32xbf16>, vector<32x64xbf16>, vector<16x64xf32> -> vector<16x64xf32>
      %225 = arith.index_cast %185 : i32 to index
      %c0_88 = arith.constant 0 : index
      %c0_89 = arith.constant 0 : index
      %226 = vector.load %arg8[%225, %c0_88, %c0_89] : memref<20x1x64xf32, #tpu.memory_space<vmem>>, vector<1x1x64xf32>
      %227 = vector.shape_cast %226 : vector<1x1x64xf32> to vector<1x64xf32>
      %228 = vector.broadcast %227 : vector<1x64xf32> to vector<16x64xf32>
      %229 = arith.addf %224, %228 : vector<16x64xf32>
      %230 = vector.extract_strided_slice %229 {offsets = [0, 0], sizes = [16, 32], strides = [1, 1]} : vector<16x64xf32> to vector<16x32xf32>
      %231 = arith.addf %181, %230 : vector<16x32xf32>
      %cst_90 = arith.constant 0.707106769 : f32
      %232 = vector.broadcast %cst_90 : f32 to vector<16x32xf32>
      %233 = arith.mulf %231, %232 : vector<16x32xf32>
      %234 = vector.extract_strided_slice %229 {offsets = [0, 32], sizes = [16, 32], strides = [1, 1]} : vector<16x64xf32> to vector<16x32xf32>
      %235 = arith.addf %183, %234 : vector<16x32xf32>
      scf.yield %233, %235 : vector<16x32xf32>, vector<16x32xf32>
    }
    %c5_i32_8 = arith.constant 5 : i32
    %c0_9 = arith.constant 0 : index
    %c0_10 = arith.constant 0 : index
    %c0_11 = arith.constant 0 : index
    %17 = vector.load %arg2[%c0_9, %c0_10, %c0_11] : memref<1x16x1xf32, #tpu.memory_space<vmem>>, vector<1x16x1xf32>
    %18 = vector.shape_cast %17 : vector<1x16x1xf32> to vector<16x1xf32>
    %19 = vector.broadcast %18 : vector<16x1xf32> to vector<16x32xf32>
    %20 = arith.mulf %16#1, %19 : vector<16x32xf32>
    %21 = arith.truncf %20 : vector<16x32xf32> to vector<16x32xbf16>
    %c0_12 = arith.constant 0 : index
    %c0_13 = arith.constant 0 : index
    %22 = vector.load %arg9[%c0_12, %c0_13] : memref<32x64xbf16, #tpu.memory_space<vmem>>, vector<32x64xbf16>
    %cst_14 = arith.constant dense<0.000000e+00> : vector<16x64xf32>
    %23 = tpu.matmul %21, %22, %cst_14 {dimension_numbers = #tpu.dot_dimension_numbers<[1], [0], [0], [1], [0, 0, 1, 1], [], []>} : vector<16x32xbf16>, vector<32x64xbf16>, vector<16x64xf32> -> vector<16x64xf32>
    %24 = arith.truncf %23 : vector<16x64xf32> to vector<16x64xbf16>
    %c0_15 = arith.constant 0 : index
    %c0_16 = arith.constant 0 : index
    %c0_17 = arith.constant 0 : index
    %25 = vector.load %arg10[%c0_15, %c0_16, %c0_17] : memref<1x16x64xbf16, #tpu.memory_space<vmem>>, vector<1x16x64xbf16>
    %26 = vector.shape_cast %25 : vector<1x16x64xbf16> to vector<16x64xbf16>
    %27 = vector.shape_cast %24 : vector<16x64xbf16> to vector<1x16x64xbf16>
    tpu.vector_store %arg10[%c0_15, %c0_16, %c0_17], %27 {strides = array<i32>} : memref<1x16x64xbf16, #tpu.memory_space<vmem>>, vector<1x16x64xbf16>,
    return
  }
  func.func @transform_0(%arg0: i32) -> (i32, i32, i32) {
    %c0_i32 = arith.constant 0 : i32
    %c0_i32_0 = arith.constant 0 : i32
    %c0_i32_1 = arith.constant 0 : i32
    return %arg0, %c0_i32, %c0_i32_0 : i32, i32, i32
  }
  func.func @transform_1(%arg0: i32) -> (i32, i32, i32) {
    %c0_i32 = arith.constant 0 : i32
    %c0_i32_0 = arith.constant 0 : i32
    %c0_i32_1 = arith.constant 0 : i32
    return %arg0, %c0_i32, %c0_i32_0 : i32, i32, i32
  }
  func.func @transform_2(%arg0: i32) -> (i32, i32) {
    %c0_i32 = arith.constant 0 : i32
    %c0_i32_0 = arith.constant 0 : i32
    %c0_i32_1 = arith.constant 0 : i32
    return %c0_i32, %c0_i32_0 : i32, i32
  }
  func.func @transform_3(%arg0: i32) -> (i32, i32) {
    %c0_i32 = arith.constant 0 : i32
    %c0_i32_0 = arith.constant 0 : i32
    %c0_i32_1 = arith.constant 0 : i32
    return %c0_i32, %c0_i32_0 : i32, i32
  }
  func.func @transform_4(%arg0: i32) -> (i32, i32, i32) {
    %c0_i32 = arith.constant 0 : i32
    %c0_i32_0 = arith.constant 0 : i32
    %c0_i32_1 = arith.constant 0 : i32
    %c0_i32_2 = arith.constant 0 : i32
    return %c0_i32, %c0_i32_0, %c0_i32_1 : i32, i32, i32
  }
  func.func @transform_5(%arg0: i32) -> (i32, i32, i32) {
    %c0_i32 = arith.constant 0 : i32
    %c0_i32_0 = arith.constant 0 : i32
    %c0_i32_1 = arith.constant 0 : i32
    %c0_i32_2 = arith.constant 0 : i32
    return %c0_i32, %c0_i32_0, %c0_i32_1 : i32, i32, i32
  }
  func.func @transform_6(%arg0: i32) -> (i32, i32, i32) {
    %c0_i32 = arith.constant 0 : i32
    %c0_i32_0 = arith.constant 0 : i32
    %c0_i32_1 = arith.constant 0 : i32
    %c0_i32_2 = arith.constant 0 : i32
    return %c0_i32, %c0_i32_0, %c0_i32_1 : i32, i32, i32
  }
  func.func @transform_7(%arg0: i32) -> (i32, i32, i32) {
    %c0_i32 = arith.constant 0 : i32
    %c0_i32_0 = arith.constant 0 : i32
    %c0_i32_1 = arith.constant 0 : i32
    %c0_i32_2 = arith.constant 0 : i32
    return %c0_i32, %c0_i32_0, %c0_i32_1 : i32, i32, i32
  }
  func.func @transform_8(%arg0: i32) -> (i32, i32) {
    %c0_i32 = arith.constant 0 : i32
    %c0_i32_0 = arith.constant 0 : i32
    %c0_i32_1 = arith.constant 0 : i32
    return %c0_i32, %c0_i32_0 : i32, i32
  }
  func.func @transform_9(%arg0: i32) -> (i32, i32, i32) {
    %c0_i32 = arith.constant 0 : i32
    %c0_i32_0 = arith.constant 0 : i32
    %c0_i32_1 = arith.constant 0 : i32
    return %arg0, %c0_i32, %c0_i32_0 : i32, i32, i32
  }
}

module attributes {stable_mosaic.version = 11 : i64} {
  func.func @_convnext_out_kernel(%arg0: i32, %arg1: memref<1x16x64xbf16, #tpu.memory_space<vmem>>, %arg2: memref<2x7x1x64xf32, #tpu.memory_space<vmem>>, %arg3: memref<2x1x64xf32, #tpu.memory_space<vmem>>, %arg4: memref<2x1x64xf32, #tpu.memory_space<vmem>>, %arg5: memref<2x1x64xf32, #tpu.memory_space<vmem>>, %arg6: memref<2x64x256xbf16, #tpu.memory_space<vmem>>, %arg7: memref<2x1x256xf32, #tpu.memory_space<vmem>>, %arg8: memref<2x256x64xbf16, #tpu.memory_space<vmem>>, %arg9: memref<2x1x64xf32, #tpu.memory_space<vmem>>, %arg10: memref<2x1x64xf32, #tpu.memory_space<vmem>>, %arg11: memref<192x16xbf16, #tpu.memory_space<vmem>>, %arg12: memref<1x16xf32, #tpu.memory_space<vmem>>, %arg13: memref<48x32xbf16, #tpu.memory_space<vmem>>, %arg14: memref<48x32xbf16, #tpu.memory_space<vmem>>, %arg15: memref<1x32xf32, #tpu.memory_space<vmem>>, %arg16: memref<1x8x32xf32, #tpu.memory_space<vmem>>) attributes {dimension_semantics = [#tpu.dimension_semantics<parallel>], iteration_bounds = array<i64: 2>, scalar_prefetch = 0 : i64, scratch_operands = 0 : i64, tpu.core_type = #tpu.core_type<tc>, window_params = [{transform_indices = @transform_0, window_bounds = array<i64: 1, 16, 64>}, {pipeline_mode = #tpu.pipeline_mode<synchronous>, transform_indices = @transform_1, window_bounds = array<i64: 2, 7, 1, 64>}, {pipeline_mode = #tpu.pipeline_mode<synchronous>, transform_indices = @transform_2, window_bounds = array<i64: 2, 1, 64>}, {pipeline_mode = #tpu.pipeline_mode<synchronous>, transform_indices = @transform_3, window_bounds = array<i64: 2, 1, 64>}, {pipeline_mode = #tpu.pipeline_mode<synchronous>, transform_indices = @transform_4, window_bounds = array<i64: 2, 1, 64>}, {pipeline_mode = #tpu.pipeline_mode<synchronous>, transform_indices = @transform_5, window_bounds = array<i64: 2, 64, 256>}, {pipeline_mode = #tpu.pipeline_mode<synchronous>, transform_indices = @transform_6, window_bounds = array<i64: 2, 1, 256>}, {pipeline_mode = #tpu.pipeline_mode<synchronous>, transform_indices = @transform_7, window_bounds = array<i64: 2, 256, 64>}, {pipeline_mode = #tpu.pipeline_mode<synchronous>, transform_indices = @transform_8, window_bounds = array<i64: 2, 1, 64>}, {pipeline_mode = #tpu.pipeline_mode<synchronous>, transform_indices = @transform_9, window_bounds = array<i64: 2, 1, 64>}, {pipeline_mode = #tpu.pipeline_mode<synchronous>, transform_indices = @transform_10, window_bounds = array<i64: 192, 16>}, {pipeline_mode = #tpu.pipeline_mode<synchronous>, transform_indices = @transform_11, window_bounds = array<i64: 1, 16>}, {pipeline_mode = #tpu.pipeline_mode<synchronous>, transform_indices = @transform_12, window_bounds = array<i64: 48, 32>}, {pipeline_mode = #tpu.pipeline_mode<synchronous>, transform_indices = @transform_13, window_bounds = array<i64: 48, 32>}, {pipeline_mode = #tpu.pipeline_mode<synchronous>, transform_indices = @transform_14, window_bounds = array<i64: 1, 32>}, {transform_indices = @transform_15, window_bounds = array<i64: 1, 8, 32>}]} {
    %0 = tpu.iota {dimensions = array<i32: 0>} : vector<16x1xi32>
    %c0 = arith.constant 0 : index
    %c0_0 = arith.constant 0 : index
    %c0_1 = arith.constant 0 : index
    %1 = vector.load %arg1[%c0, %c0_0, %c0_1] : memref<1x16x64xbf16, #tpu.memory_space<vmem>>, vector<1x16x64xbf16>
    %2 = vector.shape_cast %1 : vector<1x16x64xbf16> to vector<16x64xbf16>
    %3 = arith.extf %2 : vector<16x64xbf16> to vector<16x64xf32>
    %c0_i32 = arith.constant 0 : i32
    %c2_i32 = arith.constant 2 : i32
    %4 = arith.addi %c0_i32, %c2_i32 : i32
    %c1_i32 = arith.constant 1 : i32
    %5 = scf.for %arg17 = %c0_i32 to %4 step %c1_i32 iter_args(%arg18 = %3) -> (vector<16x64xf32>)  : i32 {
      %70 = arith.index_cast %arg17 : i32 to index
      %c0_33 = arith.constant 0 : index
      %c0_34 = arith.constant 0 : index
      %c0_35 = arith.constant 0 : index
      %71 = vector.load %arg2[%70, %c0_33, %c0_34, %c0_35] : memref<2x7x1x64xf32, #tpu.memory_space<vmem>>, vector<1x7x1x64xf32>
      %72 = vector.shape_cast %71 : vector<1x7x1x64xf32> to vector<7x1x64xf32>
      %73 = vector.extract_strided_slice %72 {offsets = [3, 0, 0], sizes = [1, 1, 64], strides = [1, 1, 1]} : vector<7x1x64xf32> to vector<1x1x64xf32>
      %74 = vector.shape_cast %73 : vector<1x1x64xf32> to vector<1x64xf32>
      %75 = vector.broadcast %74 : vector<1x64xf32> to vector<16x64xf32>
      %76 = arith.mulf %arg18, %75 : vector<16x64xf32>
      %c6_i32 = arith.constant 6 : i32
      %77 = vector.broadcast %c6_i32 : i32 to vector<16x1xi32>
      %78 = arith.cmpi sge, %0, %77 : vector<16x1xi32>
      %c6_i32_36 = arith.constant 6 : i32
      %79 = tpu.dynamic_rotate %arg18 by %c6_i32_36 dim 0 : vector<16x64xf32>, i32 -> vector<16x64xf32>
      %cst_37 = arith.constant 0.000000e+00 : f32
      %80 = vector.shape_cast %78 : vector<16x1xi1> to vector<16x1xi1>
      %81 = vector.broadcast %80 : vector<16x1xi1> to vector<16x64xi1>
      %82 = vector.broadcast %cst_37 : f32 to vector<16x64xf32>
      %83 = arith.select %81, %79, %82 : vector<16x64xi1>, vector<16x64xf32>
      %84 = vector.extract_strided_slice %72 {offsets = [0, 0, 0], sizes = [1, 1, 64], strides = [1, 1, 1]} : vector<7x1x64xf32> to vector<1x1x64xf32>
      %85 = vector.shape_cast %84 : vector<1x1x64xf32> to vector<1x64xf32>
      %86 = vector.broadcast %85 : vector<1x64xf32> to vector<16x64xf32>
      %87 = arith.mulf %83, %86 : vector<16x64xf32>
      %88 = arith.addf %76, %87 : vector<16x64xf32>
      %c4_i32 = arith.constant 4 : i32
      %89 = vector.broadcast %c4_i32 : i32 to vector<16x1xi32>
      %90 = arith.cmpi sge, %0, %89 : vector<16x1xi32>
      %c4_i32_38 = arith.constant 4 : i32
      %91 = tpu.dynamic_rotate %arg18 by %c4_i32_38 dim 0 : vector<16x64xf32>, i32 -> vector<16x64xf32>
      %cst_39 = arith.constant 0.000000e+00 : f32
      %92 = vector.shape_cast %90 : vector<16x1xi1> to vector<16x1xi1>
      %93 = vector.broadcast %92 : vector<16x1xi1> to vector<16x64xi1>
      %94 = vector.broadcast %cst_39 : f32 to vector<16x64xf32>
      %95 = arith.select %93, %91, %94 : vector<16x64xi1>, vector<16x64xf32>
      %96 = vector.extract_strided_slice %72 {offsets = [1, 0, 0], sizes = [1, 1, 64], strides = [1, 1, 1]} : vector<7x1x64xf32> to vector<1x1x64xf32>
      %97 = vector.shape_cast %96 : vector<1x1x64xf32> to vector<1x64xf32>
      %98 = vector.broadcast %97 : vector<1x64xf32> to vector<16x64xf32>
      %99 = arith.mulf %95, %98 : vector<16x64xf32>
      %100 = arith.addf %88, %99 : vector<16x64xf32>
      %c2_i32_40 = arith.constant 2 : i32
      %101 = vector.broadcast %c2_i32_40 : i32 to vector<16x1xi32>
      %102 = arith.cmpi sge, %0, %101 : vector<16x1xi32>
      %c2_i32_41 = arith.constant 2 : i32
      %103 = tpu.dynamic_rotate %arg18 by %c2_i32_41 dim 0 : vector<16x64xf32>, i32 -> vector<16x64xf32>
      %cst_42 = arith.constant 0.000000e+00 : f32
      %104 = vector.shape_cast %102 : vector<16x1xi1> to vector<16x1xi1>
      %105 = vector.broadcast %104 : vector<16x1xi1> to vector<16x64xi1>
      %106 = vector.broadcast %cst_42 : f32 to vector<16x64xf32>
      %107 = arith.select %105, %103, %106 : vector<16x64xi1>, vector<16x64xf32>
      %108 = vector.extract_strided_slice %72 {offsets = [2, 0, 0], sizes = [1, 1, 64], strides = [1, 1, 1]} : vector<7x1x64xf32> to vector<1x1x64xf32>
      %109 = vector.shape_cast %108 : vector<1x1x64xf32> to vector<1x64xf32>
      %110 = vector.broadcast %109 : vector<1x64xf32> to vector<16x64xf32>
      %111 = arith.mulf %107, %110 : vector<16x64xf32>
      %112 = arith.addf %100, %111 : vector<16x64xf32>
      %c14_i32 = arith.constant 14 : i32
      %113 = vector.broadcast %c14_i32 : i32 to vector<16x1xi32>
      %114 = arith.cmpi slt, %0, %113 : vector<16x1xi32>
      %c14_i32_43 = arith.constant 14 : i32
      %115 = tpu.dynamic_rotate %arg18 by %c14_i32_43 dim 0 : vector<16x64xf32>, i32 -> vector<16x64xf32>
      %cst_44 = arith.constant 0.000000e+00 : f32
      %116 = vector.shape_cast %114 : vector<16x1xi1> to vector<16x1xi1>
      %117 = vector.broadcast %116 : vector<16x1xi1> to vector<16x64xi1>
      %118 = vector.broadcast %cst_44 : f32 to vector<16x64xf32>
      %119 = arith.select %117, %115, %118 : vector<16x64xi1>, vector<16x64xf32>
      %120 = vector.extract_strided_slice %72 {offsets = [4, 0, 0], sizes = [1, 1, 64], strides = [1, 1, 1]} : vector<7x1x64xf32> to vector<1x1x64xf32>
      %121 = vector.shape_cast %120 : vector<1x1x64xf32> to vector<1x64xf32>
      %122 = vector.broadcast %121 : vector<1x64xf32> to vector<16x64xf32>
      %123 = arith.mulf %119, %122 : vector<16x64xf32>
      %124 = arith.addf %112, %123 : vector<16x64xf32>
      %c12_i32 = arith.constant 12 : i32
      %125 = vector.broadcast %c12_i32 : i32 to vector<16x1xi32>
      %126 = arith.cmpi slt, %0, %125 : vector<16x1xi32>
      %c12_i32_45 = arith.constant 12 : i32
      %127 = tpu.dynamic_rotate %arg18 by %c12_i32_45 dim 0 : vector<16x64xf32>, i32 -> vector<16x64xf32>
      %cst_46 = arith.constant 0.000000e+00 : f32
      %128 = vector.shape_cast %126 : vector<16x1xi1> to vector<16x1xi1>
      %129 = vector.broadcast %128 : vector<16x1xi1> to vector<16x64xi1>
      %130 = vector.broadcast %cst_46 : f32 to vector<16x64xf32>
      %131 = arith.select %129, %127, %130 : vector<16x64xi1>, vector<16x64xf32>
      %132 = vector.extract_strided_slice %72 {offsets = [5, 0, 0], sizes = [1, 1, 64], strides = [1, 1, 1]} : vector<7x1x64xf32> to vector<1x1x64xf32>
      %133 = vector.shape_cast %132 : vector<1x1x64xf32> to vector<1x64xf32>
      %134 = vector.broadcast %133 : vector<1x64xf32> to vector<16x64xf32>
      %135 = arith.mulf %131, %134 : vector<16x64xf32>
      %136 = arith.addf %124, %135 : vector<16x64xf32>
      %c10_i32 = arith.constant 10 : i32
      %137 = vector.broadcast %c10_i32 : i32 to vector<16x1xi32>
      %138 = arith.cmpi slt, %0, %137 : vector<16x1xi32>
      %c10_i32_47 = arith.constant 10 : i32
      %139 = tpu.dynamic_rotate %arg18 by %c10_i32_47 dim 0 : vector<16x64xf32>, i32 -> vector<16x64xf32>
      %cst_48 = arith.constant 0.000000e+00 : f32
      %140 = vector.shape_cast %138 : vector<16x1xi1> to vector<16x1xi1>
      %141 = vector.broadcast %140 : vector<16x1xi1> to vector<16x64xi1>
      %142 = vector.broadcast %cst_48 : f32 to vector<16x64xf32>
      %143 = arith.select %141, %139, %142 : vector<16x64xi1>, vector<16x64xf32>
      %144 = vector.extract_strided_slice %72 {offsets = [6, 0, 0], sizes = [1, 1, 64], strides = [1, 1, 1]} : vector<7x1x64xf32> to vector<1x1x64xf32>
      %145 = vector.shape_cast %144 : vector<1x1x64xf32> to vector<1x64xf32>
      %146 = vector.broadcast %145 : vector<1x64xf32> to vector<16x64xf32>
      %147 = arith.mulf %143, %146 : vector<16x64xf32>
      %148 = arith.addf %136, %147 : vector<16x64xf32>
      %149 = arith.index_cast %arg17 : i32 to index
      %c0_49 = arith.constant 0 : index
      %c0_50 = arith.constant 0 : index
      %150 = vector.load %arg3[%149, %c0_49, %c0_50] : memref<2x1x64xf32, #tpu.memory_space<vmem>>, vector<1x1x64xf32>
      %151 = vector.shape_cast %150 : vector<1x1x64xf32> to vector<1x64xf32>
      %152 = vector.broadcast %151 : vector<1x64xf32> to vector<16x64xf32>
      %153 = arith.addf %148, %152 : vector<16x64xf32>
      %cst_51 = arith.constant dense<0.000000e+00> : vector<16xf32>
      %154 = vector.multi_reduction <add>, %153, %cst_51 [1] : vector<16x64xf32> to vector<16xf32>
      %155 = vector.shape_cast %154 : vector<16xf32> to vector<16x1xf32>
      %cst_52 = arith.constant 6.400000e+01 : f32
      %156 = vector.broadcast %cst_52 : f32 to vector<16x1xf32>
      %157 = arith.divf %155, %156 : vector<16x1xf32>
      %158 = vector.broadcast %157 : vector<16x1xf32> to vector<16x64xf32>
      %159 = arith.subf %153, %158 : vector<16x64xf32>
      %160 = arith.mulf %159, %159 : vector<16x64xf32>
      %cst_53 = arith.constant dense<0.000000e+00> : vector<16xf32>
      %161 = vector.multi_reduction <add>, %160, %cst_53 [1] : vector<16x64xf32> to vector<16xf32>
      %162 = vector.shape_cast %161 : vector<16xf32> to vector<16x1xf32>
      %cst_54 = arith.constant 6.400000e+01 : f32
      %163 = vector.broadcast %cst_54 : f32 to vector<16x1xf32>
      %164 = arith.divf %162, %163 : vector<16x1xf32>
      %165 = vector.broadcast %157 : vector<16x1xf32> to vector<16x64xf32>
      %166 = arith.subf %153, %165 : vector<16x64xf32>
      %cst_55 = arith.constant 9.99999997E-7 : f32
      %167 = vector.broadcast %cst_55 : f32 to vector<16x1xf32>
      %168 = arith.addf %164, %167 : vector<16x1xf32>
      %169 = math.rsqrt %168 : vector<16x1xf32>
      %170 = vector.broadcast %169 : vector<16x1xf32> to vector<16x64xf32>
      %171 = arith.mulf %166, %170 : vector<16x64xf32>
      %172 = arith.index_cast %arg17 : i32 to index
      %c0_56 = arith.constant 0 : index
      %c0_57 = arith.constant 0 : index
      %173 = vector.load %arg4[%172, %c0_56, %c0_57] : memref<2x1x64xf32, #tpu.memory_space<vmem>>, vector<1x1x64xf32>
      %174 = vector.shape_cast %173 : vector<1x1x64xf32> to vector<1x64xf32>
      %175 = vector.broadcast %174 : vector<1x64xf32> to vector<16x64xf32>
      %176 = arith.mulf %171, %175 : vector<16x64xf32>
      %177 = arith.index_cast %arg17 : i32 to index
      %c0_58 = arith.constant 0 : index
      %c0_59 = arith.constant 0 : index
      %178 = vector.load %arg5[%177, %c0_58, %c0_59] : memref<2x1x64xf32, #tpu.memory_space<vmem>>, vector<1x1x64xf32>
      %179 = vector.shape_cast %178 : vector<1x1x64xf32> to vector<1x64xf32>
      %180 = vector.broadcast %179 : vector<1x64xf32> to vector<16x64xf32>
      %181 = arith.addf %176, %180 : vector<16x64xf32>
      %182 = arith.truncf %181 : vector<16x64xf32> to vector<16x64xbf16>
      %183 = arith.index_cast %arg17 : i32 to index
      %c0_60 = arith.constant 0 : index
      %c0_61 = arith.constant 0 : index
      %184 = vector.load %arg6[%183, %c0_60, %c0_61] : memref<2x64x256xbf16, #tpu.memory_space<vmem>>, vector<1x64x256xbf16>
      %185 = vector.shape_cast %184 : vector<1x64x256xbf16> to vector<64x256xbf16>
      %cst_62 = arith.constant dense<0.000000e+00> : vector<16x256xf32>
      %186 = tpu.matmul %182, %185, %cst_62 {dimension_numbers = #tpu.dot_dimension_numbers<[1], [0], [0], [1], [0, 0, 1, 1], [], []>} : vector<16x64xbf16>, vector<64x256xbf16>, vector<16x256xf32> -> vector<16x256xf32>
      %187 = arith.index_cast %arg17 : i32 to index
      %c0_63 = arith.constant 0 : index
      %c0_64 = arith.constant 0 : index
      %188 = vector.load %arg7[%187, %c0_63, %c0_64] : memref<2x1x256xf32, #tpu.memory_space<vmem>>, vector<1x1x256xf32>
      %189 = vector.shape_cast %188 : vector<1x1x256xf32> to vector<1x256xf32>
      %190 = vector.broadcast %189 : vector<1x256xf32> to vector<16x256xf32>
      %191 = arith.addf %186, %190 : vector<16x256xf32>
      %cst_65 = arith.constant 5.000000e-01 : f32
      %192 = vector.broadcast %cst_65 : f32 to vector<16x256xf32>
      %193 = arith.mulf %192, %191 : vector<16x256xf32>
      %cst_66 = arith.constant 4.471500e-02 : f32
      %194 = vector.broadcast %cst_66 : f32 to vector<16x256xf32>
      %195 = arith.mulf %194, %191 : vector<16x256xf32>
      %196 = arith.mulf %195, %191 : vector<16x256xf32>
      %197 = arith.mulf %196, %191 : vector<16x256xf32>
      %198 = arith.addf %191, %197 : vector<16x256xf32>
      %cst_67 = arith.constant 0.797884583 : f32
      %199 = vector.broadcast %cst_67 : f32 to vector<16x256xf32>
      %200 = arith.mulf %199, %198 : vector<16x256xf32>
      %201 = math.tanh %200 : vector<16x256xf32>
      %cst_68 = arith.constant 1.000000e+00 : f32
      %202 = vector.broadcast %cst_68 : f32 to vector<16x256xf32>
      %203 = arith.addf %202, %201 : vector<16x256xf32>
      %204 = arith.mulf %193, %203 : vector<16x256xf32>
      %205 = arith.truncf %204 : vector<16x256xf32> to vector<16x256xbf16>
      %206 = arith.index_cast %arg17 : i32 to index
      %c0_69 = arith.constant 0 : index
      %c0_70 = arith.constant 0 : index
      %207 = vector.load %arg8[%206, %c0_69, %c0_70] : memref<2x256x64xbf16, #tpu.memory_space<vmem>>, vector<1x256x64xbf16>
      %208 = vector.shape_cast %207 : vector<1x256x64xbf16> to vector<256x64xbf16>
      %cst_71 = arith.constant dense<0.000000e+00> : vector<16x64xf32>
      %209 = tpu.matmul %205, %208, %cst_71 {dimension_numbers = #tpu.dot_dimension_numbers<[1], [0], [0], [1], [0, 0, 1, 1], [], []>} : vector<16x256xbf16>, vector<256x64xbf16>, vector<16x64xf32> -> vector<16x64xf32>
      %210 = arith.index_cast %arg17 : i32 to index
      %c0_72 = arith.constant 0 : index
      %c0_73 = arith.constant 0 : index
      %211 = vector.load %arg9[%210, %c0_72, %c0_73] : memref<2x1x64xf32, #tpu.memory_space<vmem>>, vector<1x1x64xf32>
      %212 = vector.shape_cast %211 : vector<1x1x64xf32> to vector<1x64xf32>
      %213 = vector.broadcast %212 : vector<1x64xf32> to vector<16x64xf32>
      %214 = arith.addf %209, %213 : vector<16x64xf32>
      %215 = arith.index_cast %arg17 : i32 to index
      %c0_74 = arith.constant 0 : index
      %c0_75 = arith.constant 0 : index
      %216 = vector.load %arg10[%215, %c0_74, %c0_75] : memref<2x1x64xf32, #tpu.memory_space<vmem>>, vector<1x1x64xf32>
      %217 = vector.shape_cast %216 : vector<1x1x64xf32> to vector<1x64xf32>
      %218 = vector.broadcast %217 : vector<1x64xf32> to vector<16x64xf32>
      %219 = arith.mulf %218, %214 : vector<16x64xf32>
      %220 = arith.addf %arg18, %219 : vector<16x64xf32>
      scf.yield %220 : vector<16x64xf32>
    }
    %c2_i32_2 = arith.constant 2 : i32
    %c1_i32_3 = arith.constant 1 : i32
    %6 = vector.broadcast %c1_i32_3 : i32 to vector<16x1xi32>
    %7 = arith.cmpi sge, %0, %6 : vector<16x1xi32>
    %c1_i32_4 = arith.constant 1 : i32
    %8 = tpu.dynamic_rotate %5 by %c1_i32_4 dim 0 : vector<16x64xf32>, i32 -> vector<16x64xf32>
    %cst = arith.constant 0.000000e+00 : f32
    %9 = vector.shape_cast %7 : vector<16x1xi1> to vector<16x1xi1>
    %10 = vector.broadcast %9 : vector<16x1xi1> to vector<16x64xi1>
    %11 = vector.broadcast %cst : f32 to vector<16x64xf32>
    %12 = arith.select %10, %8, %11 : vector<16x64xi1>, vector<16x64xf32>
    %c15_i32 = arith.constant 15 : i32
    %13 = vector.broadcast %c15_i32 : i32 to vector<16x1xi32>
    %14 = arith.cmpi slt, %0, %13 : vector<16x1xi32>
    %c15_i32_5 = arith.constant 15 : i32
    %15 = tpu.dynamic_rotate %5 by %c15_i32_5 dim 0 : vector<16x64xf32>, i32 -> vector<16x64xf32>
    %cst_6 = arith.constant 0.000000e+00 : f32
    %16 = vector.shape_cast %14 : vector<16x1xi1> to vector<16x1xi1>
    %17 = vector.broadcast %16 : vector<16x1xi1> to vector<16x64xi1>
    %18 = vector.broadcast %cst_6 : f32 to vector<16x64xf32>
    %19 = arith.select %17, %15, %18 : vector<16x64xi1>, vector<16x64xf32>
    %20 = tpu.concatenate %12, %5, %19 in 1 : vector<16x64xf32>, vector<16x64xf32>, vector<16x64xf32> -> vector<16x192xf32>
    %21 = arith.truncf %20 : vector<16x192xf32> to vector<16x192xbf16>
    %c0_7 = arith.constant 0 : index
    %c0_8 = arith.constant 0 : index
    %22 = vector.load %arg11[%c0_7, %c0_8] : memref<192x16xbf16, #tpu.memory_space<vmem>>, vector<192x16xbf16>
    %cst_9 = arith.constant dense<0.000000e+00> : vector<16x16xf32>
    %23 = tpu.matmul %21, %22, %cst_9 {dimension_numbers = #tpu.dot_dimension_numbers<[1], [0], [0], [1], [0, 0, 1, 1], [], []>} : vector<16x192xbf16>, vector<192x16xbf16>, vector<16x16xf32> -> vector<16x16xf32>
    %c0_10 = arith.constant 0 : index
    %c0_11 = arith.constant 0 : index
    %24 = vector.load %arg12[%c0_10, %c0_11] : memref<1x16xf32, #tpu.memory_space<vmem>>, vector<1x16xf32>
    %25 = vector.broadcast %24 : vector<1x16xf32> to vector<16x16xf32>
    %26 = arith.addf %23, %25 : vector<16x16xf32>
    %cst_12 = arith.constant 5.000000e-01 : f32
    %27 = vector.broadcast %cst_12 : f32 to vector<16x16xf32>
    %28 = arith.mulf %27, %26 : vector<16x16xf32>
    %cst_13 = arith.constant 4.471500e-02 : f32
    %29 = vector.broadcast %cst_13 : f32 to vector<16x16xf32>
    %30 = arith.mulf %29, %26 : vector<16x16xf32>
    %31 = arith.mulf %30, %26 : vector<16x16xf32>
    %32 = arith.mulf %31, %26 : vector<16x16xf32>
    %33 = arith.addf %26, %32 : vector<16x16xf32>
    %cst_14 = arith.constant 0.797884583 : f32
    %34 = vector.broadcast %cst_14 : f32 to vector<16x16xf32>
    %35 = arith.mulf %34, %33 : vector<16x16xf32>
    %36 = math.tanh %35 : vector<16x16xf32>
    %cst_15 = arith.constant 1.000000e+00 : f32
    %37 = vector.broadcast %cst_15 : f32 to vector<16x16xf32>
    %38 = arith.addf %37, %36 : vector<16x16xf32>
    %39 = arith.mulf %28, %38 : vector<16x16xf32>
    %c1_i32_16 = arith.constant 1 : i32
    %40 = vector.broadcast %c1_i32_16 : i32 to vector<16x1xi32>
    %41 = arith.cmpi sge, %0, %40 : vector<16x1xi32>
    %c1_i32_17 = arith.constant 1 : i32
    %42 = tpu.dynamic_rotate %39 by %c1_i32_17 dim 0 : vector<16x16xf32>, i32 -> vector<16x16xf32>
    %cst_18 = arith.constant 0.000000e+00 : f32
    %43 = vector.shape_cast %41 : vector<16x1xi1> to vector<16x1xi1>
    %44 = vector.broadcast %43 : vector<16x1xi1> to vector<16x16xi1>
    %45 = vector.broadcast %cst_18 : f32 to vector<16x16xf32>
    %46 = arith.select %44, %42, %45 : vector<16x16xi1>, vector<16x16xf32>
    %c15_i32_19 = arith.constant 15 : i32
    %47 = vector.broadcast %c15_i32_19 : i32 to vector<16x1xi32>
    %48 = arith.cmpi slt, %0, %47 : vector<16x1xi32>
    %c15_i32_20 = arith.constant 15 : i32
    %49 = tpu.dynamic_rotate %39 by %c15_i32_20 dim 0 : vector<16x16xf32>, i32 -> vector<16x16xf32>
    %cst_21 = arith.constant 0.000000e+00 : f32
    %50 = vector.shape_cast %48 : vector<16x1xi1> to vector<16x1xi1>
    %51 = vector.broadcast %50 : vector<16x1xi1> to vector<16x16xi1>
    %52 = vector.broadcast %cst_21 : f32 to vector<16x16xf32>
    %53 = arith.select %51, %49, %52 : vector<16x16xi1>, vector<16x16xf32>
    %54 = tpu.concatenate %46, %39, %53 in 1 : vector<16x16xf32>, vector<16x16xf32>, vector<16x16xf32> -> vector<16x48xf32>
    %55 = vector.extract_strided_slice %54 {offsets = [0, 0], sizes = [8, 48], strides = [1, 1]} : vector<16x48xf32> to vector<8x48xf32>
    %56 = arith.truncf %55 : vector<8x48xf32> to vector<8x48xbf16>
    %c0_22 = arith.constant 0 : index
    %c0_23 = arith.constant 0 : index
    %57 = vector.load %arg13[%c0_22, %c0_23] : memref<48x32xbf16, #tpu.memory_space<vmem>>, vector<48x32xbf16>
    %cst_24 = arith.constant dense<0.000000e+00> : vector<8x32xf32>
    %58 = tpu.matmul %56, %57, %cst_24 {dimension_numbers = #tpu.dot_dimension_numbers<[1], [0], [0], [1], [0, 0, 1, 1], [], []>} : vector<8x48xbf16>, vector<48x32xbf16>, vector<8x32xf32> -> vector<8x32xf32>
    %59 = vector.extract_strided_slice %54 {offsets = [8, 0], sizes = [8, 48], strides = [1, 1]} : vector<16x48xf32> to vector<8x48xf32>
    %60 = arith.truncf %59 : vector<8x48xf32> to vector<8x48xbf16>
    %c0_25 = arith.constant 0 : index
    %c0_26 = arith.constant 0 : index
    %61 = vector.load %arg14[%c0_25, %c0_26] : memref<48x32xbf16, #tpu.memory_space<vmem>>, vector<48x32xbf16>
    %cst_27 = arith.constant dense<0.000000e+00> : vector<8x32xf32>
    %62 = tpu.matmul %60, %61, %cst_27 {dimension_numbers = #tpu.dot_dimension_numbers<[1], [0], [0], [1], [0, 0, 1, 1], [], []>} : vector<8x48xbf16>, vector<48x32xbf16>, vector<8x32xf32> -> vector<8x32xf32>
    %63 = arith.addf %58, %62 : vector<8x32xf32>
    %c0_28 = arith.constant 0 : index
    %c0_29 = arith.constant 0 : index
    %64 = vector.load %arg15[%c0_28, %c0_29] : memref<1x32xf32, #tpu.memory_space<vmem>>, vector<1x32xf32>
    %65 = vector.broadcast %64 : vector<1x32xf32> to vector<8x32xf32>
    %66 = arith.addf %63, %65 : vector<8x32xf32>
    %c0_30 = arith.constant 0 : index
    %c0_31 = arith.constant 0 : index
    %c0_32 = arith.constant 0 : index
    %67 = vector.load %arg16[%c0_30, %c0_31, %c0_32] : memref<1x8x32xf32, #tpu.memory_space<vmem>>, vector<1x8x32xf32>
    %68 = vector.shape_cast %67 : vector<1x8x32xf32> to vector<8x32xf32>
    %69 = vector.shape_cast %66 : vector<8x32xf32> to vector<1x8x32xf32>
    tpu.vector_store %arg16[%c0_30, %c0_31, %c0_32], %69 {strides = array<i32>} : memref<1x8x32xf32, #tpu.memory_space<vmem>>, vector<1x8x32xf32>,
    return
  }
  func.func @transform_0(%arg0: i32) -> (i32, i32, i32) {
    %c0_i32 = arith.constant 0 : i32
    %c0_i32_0 = arith.constant 0 : i32
    %c0_i32_1 = arith.constant 0 : i32
    return %arg0, %c0_i32, %c0_i32_0 : i32, i32, i32
  }
  func.func @transform_1(%arg0: i32) -> (i32, i32, i32, i32) {
    %c0_i32 = arith.constant 0 : i32
    %c0_i32_0 = arith.constant 0 : i32
    %c0_i32_1 = arith.constant 0 : i32
    %c0_i32_2 = arith.constant 0 : i32
    %c0_i32_3 = arith.constant 0 : i32
    return %c0_i32, %c0_i32_0, %c0_i32_1, %c0_i32_2 : i32, i32, i32, i32
  }
  func.func @transform_2(%arg0: i32) -> (i32, i32, i32) {
    %c0_i32 = arith.constant 0 : i32
    %c0_i32_0 = arith.constant 0 : i32
    %c0_i32_1 = arith.constant 0 : i32
    %c0_i32_2 = arith.constant 0 : i32
    return %c0_i32, %c0_i32_0, %c0_i32_1 : i32, i32, i32
  }
  func.func @transform_3(%arg0: i32) -> (i32, i32, i32) {
    %c0_i32 = arith.constant 0 : i32
    %c0_i32_0 = arith.constant 0 : i32
    %c0_i32_1 = arith.constant 0 : i32
    %c0_i32_2 = arith.constant 0 : i32
    return %c0_i32, %c0_i32_0, %c0_i32_1 : i32, i32, i32
  }
  func.func @transform_4(%arg0: i32) -> (i32, i32, i32) {
    %c0_i32 = arith.constant 0 : i32
    %c0_i32_0 = arith.constant 0 : i32
    %c0_i32_1 = arith.constant 0 : i32
    %c0_i32_2 = arith.constant 0 : i32
    return %c0_i32, %c0_i32_0, %c0_i32_1 : i32, i32, i32
  }
  func.func @transform_5(%arg0: i32) -> (i32, i32, i32) {
    %c0_i32 = arith.constant 0 : i32
    %c0_i32_0 = arith.constant 0 : i32
    %c0_i32_1 = arith.constant 0 : i32
    %c0_i32_2 = arith.constant 0 : i32
    return %c0_i32, %c0_i32_0, %c0_i32_1 : i32, i32, i32
  }
  func.func @transform_6(%arg0: i32) -> (i32, i32, i32) {
    %c0_i32 = arith.constant 0 : i32
    %c0_i32_0 = arith.constant 0 : i32
    %c0_i32_1 = arith.constant 0 : i32
    %c0_i32_2 = arith.constant 0 : i32
    return %c0_i32, %c0_i32_0, %c0_i32_1 : i32, i32, i32
  }
  func.func @transform_7(%arg0: i32) -> (i32, i32, i32) {
    %c0_i32 = arith.constant 0 : i32
    %c0_i32_0 = arith.constant 0 : i32
    %c0_i32_1 = arith.constant 0 : i32
    %c0_i32_2 = arith.constant 0 : i32
    return %c0_i32, %c0_i32_0, %c0_i32_1 : i32, i32, i32
  }
  func.func @transform_8(%arg0: i32) -> (i32, i32, i32) {
    %c0_i32 = arith.constant 0 : i32
    %c0_i32_0 = arith.constant 0 : i32
    %c0_i32_1 = arith.constant 0 : i32
    %c0_i32_2 = arith.constant 0 : i32
    return %c0_i32, %c0_i32_0, %c0_i32_1 : i32, i32, i32
  }
  func.func @transform_9(%arg0: i32) -> (i32, i32, i32) {
    %c0_i32 = arith.constant 0 : i32
    %c0_i32_0 = arith.constant 0 : i32
    %c0_i32_1 = arith.constant 0 : i32
    %c0_i32_2 = arith.constant 0 : i32
    return %c0_i32, %c0_i32_0, %c0_i32_1 : i32, i32, i32
  }
  func.func @transform_10(%arg0: i32) -> (i32, i32) {
    %c0_i32 = arith.constant 0 : i32
    %c0_i32_0 = arith.constant 0 : i32
    %c0_i32_1 = arith.constant 0 : i32
    return %c0_i32, %c0_i32_0 : i32, i32
  }
  func.func @transform_11(%arg0: i32) -> (i32, i32) {
    %c0_i32 = arith.constant 0 : i32
    %c0_i32_0 = arith.constant 0 : i32
    %c0_i32_1 = arith.constant 0 : i32
    return %c0_i32, %c0_i32_0 : i32, i32
  }
  func.func @transform_12(%arg0: i32) -> (i32, i32) {
    %c0_i32 = arith.constant 0 : i32
    %c0_i32_0 = arith.constant 0 : i32
    %c0_i32_1 = arith.constant 0 : i32
    return %c0_i32, %c0_i32_0 : i32, i32
  }
  func.func @transform_13(%arg0: i32) -> (i32, i32) {
    %c0_i32 = arith.constant 0 : i32
    %c0_i32_0 = arith.constant 0 : i32
    %c0_i32_1 = arith.constant 0 : i32
    return %c0_i32, %c0_i32_0 : i32, i32
  }
  func.func @transform_14(%arg0: i32) -> (i32, i32) {
    %c0_i32 = arith.constant 0 : i32
    %c0_i32_0 = arith.constant 0 : i32
    %c0_i32_1 = arith.constant 0 : i32
    return %c0_i32, %c0_i32_0 : i32, i32
  }
  func.func @transform_15(%arg0: i32) -> (i32, i32, i32) {
    %c0_i32 = arith.constant 0 : i32
    %c0_i32_0 = arith.constant 0 : i32
    %c0_i32_1 = arith.constant 0 : i32
    return %arg0, %c0_i32, %c0_i32_0 : i32, i32, i32
  }
}

</mosaic_0001>

<bundles_post_ra>
// kernel: dvae_encoder_forward.3
= control target key start
LH: loop header
LB: loop body
LE: loop exit
PB: predicated region body
PF: predicated region fallthrough
CT: control target
= control target key end

     0   :  { %s2331_s0 = inlined_call_operand.vmem [shape: bf16[2,16,64], index: 0, kind: input, shape index: {}]   ;;  %s2332_s1 = inlined_call_operand.vmem [shape: f32[2,7,1,64], index: 1, kind: input, shape index: {}]   ;;  %s2333_s2 = inlined_call_operand.vmem [shape: f32[2,1,64], index: 2, kind: input, shape index: {}]   ;;  %s2334_s3 = inlined_call_operand.vmem [shape: f32[2,1,64], index: 3, kind: input, shape index: {}]   ;;  %s2335_s4 = inlined_call_operand.vmem [shape: f32[2,1,64], index: 4, kind: input, shape index: {}]   ;;  %s2336_s5 = inlined_call_operand.vmem [shape: bf16[2,64,256], index: 5, kind: input, shape index: {}]   ;;  %s2337_s6 = inlined_call_operand.vmem [shape: f32[2,1,256], index: 6, kind: input, shape index: {}]   ;;  %s2338_s7 = inlined_call_operand.vmem [shape: bf16[2,256,64], index: 7, kind: input, shape index: {}]   ;;  %s2339_s8 = inlined_call_operand.vmem [shape: f32[2,1,64], index: 8, kind: input, shape index: {}]   ;;  %s2340_s9 = inlined_call_operand.vmem [shape: f32[2,1,64], index: 9, kind: input, shape index: {}]   ;;  %s2341_s10 = inlined_call_operand.vmem [shape: bf16[192,16], index: 10, kind: input, shape index: {}]   ;;  %s2342_s11 = inlined_call_operand.vmem [shape: f32[1,16], index: 11, kind: input, shape index: {}]   ;;  %s2343_s12 = inlined_call_operand.vmem [shape: bf16[48,32], index: 12, kind: input, shape index: {}]   ;;  %s2344_s13 = inlined_call_operand.vmem [shape: bf16[48,32], index: 13, kind: input, shape index: {}]   ;;  %s2345_s14 = inlined_call_operand.vmem [shape: f32[1,32], index: 14, kind: input, shape index: {}]   ;;  %s2346_s15 = inlined_call_operand.hbm [shape: f32[2,8,32], index: 15, kind: output, shape index: {}]  }
   0x1   :  { %2349 = sst [smem:[#allocation7_spill]] %s2331_s0 }
   0x2   :  { %2350 = sst [smem:[#allocation8_spill]] %s2332_s1 }
   0x3   :  { %2351 = sst [smem:[#allocation9_spill]] %s2333_s2 }
   0x4   :  { %20 = vsyncpa [#allocation3], 0 }
   0x5   :  { %22 = vsyncpa [#allocation3 + $0x1], 0  ;;  %s1976_s18 = smov 0   ;;  %s1978_s19 = smov 0  }
   0x6   :  { %s1980_s20 = smov 0   ;;  %s1982_s21 = smov 0  }
   0x7 LB: > { %2352 = sst [smem:[#allocation5_spill]] %s1870_s20  ;;  %s1997_s22 = sadd.s32 4294967295, %s1874_s21   ;;  %s1874_s21 = sphi %s1982_s21, %s2370_s21   ;;  %s1870_s20 = sphi %s1980_s20, %s2367_s20   ;;  %s1866_s19 = sphi %s1978_s19, %s2369_s19   ;;  %s1862_s18 = sphi %s1976_s18, %s2368_s18  }
   0x8   : > { %s1530_s23 = sadd.s32 4294967294, %s1874_s21   ;;  %s2001_s24 = sadd.s32 1, %s1874_s21  }
   0x9   : > { %s355_s25 = sadd.s32 1, %s1870_s20  ;;  %s352_s26 = ssub.s32 %s1874_s21, %s2001_s24 }
   0xa   : > { %p365_p0 = scmp.ne.s32.totalorder %s1870_s20, %s1866_s19  ;;  %p353_p1 = scmp.eq.s32.totalorder %s352_s26, 0 }
   0xb   : > { %p366_p2 = scmp.eq.s32.totalorder %s1997_s22, 1  ;;  %p371_p3 = scmp.ne.s32.totalorder %s1866_s19, %s1862_s18 }
   0xc   : > { %p372_p4 = scmp.eq.s32.totalorder %s1530_s23, 1  ;;  %p1533_p7 = scmp.ge.s32.totalorder %s1874_s21, 1 }
   0xd   : > { %s2012_s27 = scalar_select %p353_p1, %s1870_s20, %s355_s25  }
   0xe   : > { %p2014_p5 = por %p366_p2, %p365_p0  ;;  %p2018_p6 = por %p372_p4, %p371_p3 }
   0xf   : > { %2353 = sst [smem:[#allocation6_spill]] %s2012_s27  ;;  %p440_p8 = scmp.lt.s32.totalorder %s1874_s21, 3 }
  0x11   : > { %p441_p9 = pnand %p1533_p7, %p440_p8 }
  0x12   : > { %s2348_s30 = sand.u32 (!%p441_p9), 1, %s1866_s19   ;;  %p488_p10 = scmp.lt.s32.totalorder (!%p441_p9), %s1997_s22, 1  ;;  %v494_v0 = vlaneseq (!%p441_p9) }
  0x13   : > { %444 = sbr.rel (%p441_p9) target bundleno = 1572 (0x624), region = 80  ;;  %s2028_s16 = sshll.u32 (!%p441_p9), %s2348_s30, 3 }
  0x14   : > { %v2030_v1 = vshrl.u32 (!%p441_p9), %v494_v0, 7  ;;  %s2356_s0 = sld [smem:[#allocation7_spill]] (!%p441_p9)  ;;  %s2044_s30 = smov (!%p441_p9), 0  }
  0x16   : > { %v2034_v2 = vadd.s32 (!%p441_p9), 8, %v2030_v1 }
  0x1a   : > { %s489_s17 = scalar_select %p488_p10, %s1997_s22, 1 }
  0x1c   : > { %s1606_s23 = sshll.u32 %s489_s17, 3 }
  0x1d   : > { %s492_s27 = scalar_lea.vmem %s2356_s0, %s1606_s23 }
  0x1e   : > { %v1610_v3 = vld [vmem:[%s492_s27] sm:$0xff]  }
  0x1f   : > { %v1611_v4 = vunpack.c.l.bf16 %v1610_v3   ;;  %v1612_v5 = vunpack.c.h.bf16 %v1610_v3  }
  0x20 LB: >> { %vm526_vm0 = vcmp.ge.s32.totalorder %v2030_v1, 6  ;;  %vm530_vm1 = vcmp.lt.s32.totalorder %v2030_v1, 6  ;;  %vm553_vm2 = vcmp.lt.s32.totalorder %v2030_v1, 4  ;;  %s509_s27 = smul.u32 7, %s1886_s30  ;;  %v528_v6 = vrot.slane %v1882_v4, 2  ;;  %s2357_s1 = sld [smem:[#allocation8_spill]]  ;;  %s1886_s30 = sphi %s2044_s30, %s506_s30   ;;  %v1882_v4 = vphi %v1611_v4, %v2362_v4   ;;  %v1878_v5 = vphi %v1612_v5, %v2361_v5  }
  0x21   : >> { %v529_v7 = vrot.slane %v1878_v5, 2  ;;  %v551_v8 = vrot.slane %v1882_v4, 4  ;;  %v552_v9 = vrot.slane %v1878_v5, 4  ;;  %vm549_vm3 = vcmp.ge.s32.totalorder %v2030_v1, 4  ;;  %s1608_s26 = sshll.u32 %s1886_s30, 7  ;;  %s2358_s2 = sld [smem:[#allocation9_spill]] }
  0x22   : >> { %v574_v10 = vrot.slane %v1882_v4, 6  ;;  %v575_v11 = vrot.slane %v1878_v5, 6  ;;  %vm576_vm4 = vcmp.lt.s32.totalorder %v2030_v1, 2  ;;  %vm572_vm5 = vcmp.ge.s32.totalorder %v2030_v1, 2  ;;  %s2091_s23 = scalar_lea.vmem %s2338_s7, %s1608_s26  ;;  %s697_s0 = scalar_lea.vmem %s2335_s4, %s1886_s30 }
  0x23   : >> { %v531_v12 = vsel %vm530_vm1, %v528_v6, %v529_v7  ;;  %v532_v13 = vsel %vm530_vm1, %v529_v7, %v528_v6  ;;  %v555_v14 = vsel %vm553_vm2, %v552_v9, %v551_v8  ;;  %v554_v20 = vsel %vm553_vm2, %v551_v8, %v552_v9 }
  0x24   : >> { %v578_v17 = vsel %vm576_vm4, %v575_v11, %v574_v10  ;;  %v577_v21 = vsel %vm576_vm4, %v574_v10, %v575_v11  ;;  %v537_v25 = vsel %vm526_vm0, %v532_v13, 0.0  ;;  %v560_v26 = vsel %vm549_vm3, %v555_v14, 0.0 }
  0x25   : >> { %v583_v27 = vsel %vm572_vm5, %v578_v17, 0.0  ;;  %vm596_vm6 = vcmp.lt.s32.totalorder %v2034_v2, 14  ;;  %vm614_vm7 = vcmp.lt.s32.totalorder %v2034_v2, 12  ;;  %vm632_vm8 = vcmp.lt.s32.totalorder %v2034_v2, 10 }
  0x26   : >> { %s2070_s25 = scalar_lea.vmem %s2357_s1, %s509_s27  ;;  %v602_v38 = vsel %vm596_vm6, %v532_v13, 0.0  ;;  %v620_v39 = vsel %vm614_vm7, %v555_v14, 0.0  ;;  %v638_v40 = vsel %vm632_vm8, %v578_v17, 0.0  ;;  %vm659_vm9 = vcmask 523264   ;;  %s687_s27 = scalar_lea.vmem %s2334_s3, %s1886_s30 }
  0x27   : >> { %v1538_v15 = vld [vmem:[%s2070_s25] ss:$0 sm:$0xff]  ;;  %v1539_v16 = vld [vmem:[%s2070_s25 + $0x1] ss:$0 sm:$0xff]  ;;  %v1540_v18 = vld [vmem:[%s2070_s25 + $0x2] ss:$0 sm:$0xff]  ;;  %s649_s17 = scalar_lea.vmem %s2358_s2, %s1886_s30 }
  0x28   : >> { %v1537_v19 = vld [vmem:[%s2070_s25 + $0x3] ss:$0 sm:$0xff]  ;;  %v546_v22 = vmul.f32 %v1538_v15, %v531_v12  ;;  %v1541_v23 = vld [vmem:[%s2070_s25 + $0x4] ss:$0 sm:$0xff]  ;;  %v545_v28 = vmul.f32 %v1538_v15, %v537_v25  ;;  %v568_v29 = vmul.f32 %v1539_v16, %v560_v26  ;;  %v1542_v30 = vld [vmem:[%s2070_s25 + $0x5] ss:$0 sm:$0xff]  ;;  %v569_v31 = vmul.f32 %v1539_v16, %v554_v20 }
  0x29   : >> { %v524_v24 = vmul.f32 %v1882_v4, %v1537_v19  ;;  %v591_v32 = vmul.f32 %v1540_v18, %v583_v27  ;;  %v592_v33 = vmul.f32 %v1540_v18, %v577_v21  ;;  %v525_v34 = vmul.f32 %v1878_v5, %v1537_v19  ;;  %v1543_v36 = vld [vmem:[%s2070_s25 + $0x6] ss:$0 sm:$0xff]  ;;  %v1544_v51 = vld [vmem:[%s649_s17] ss:$0 sm:$0xff]  ;;  %s1607_s25 = sshll.u32 %s1886_s30, 6 }
  0x2a   : >> { %v609_v42 = vmul.f32 %v1541_v23, %v531_v12  ;;  %v610_v44 = vmul.f32 %v1541_v23, %v602_v38  ;;  %v627_v46 = vmul.f32 %v1542_v30, %v554_v20  ;;  %v628_v48 = vmul.f32 %v1542_v30, %v620_v39  ;;  %s710_s17 = scalar_lea.vmem %s2336_s5, %s1607_s25  ;;  %v1745_v38 = vld [vmem:[%s2091_s23 + $0x40] sm:$0xff]   ;;  %s1037_s25 = scalar_lea.vmem %s2340_s9, %s1886_s30 }
  0x2b   : >> { %v547_v35 = vadd.f32 %v545_v28, %v524_v24  ;;  %v548_v37 = vadd.f32 %v546_v22, %v525_v34  ;;  %v645_v50 = vmul.f32 %v1543_v36, %v577_v21  ;;  %v646_v53 = vmul.f32 %v1543_v36, %v638_v40  ;;  %v1733_v12 = vld [vmem:[%s710_s17 + $0x4] ss:$8 sps:$4 sm:$0xff]   ;;  %v1735_v13 = vld [vmem:[%s710_s17] ss:$8 sps:$4 sm:$0xff]   ;;  %v1736_v14 = vld [vmem:[%s710_s17 + $0x14] ss:$8 sps:$4 sm:$0xff]   ;;  %1613 = vmatprep.subr.bf16.mxu1 %v1745_v38 }
  0x2c   : >> { %776 = vmatprep.subr.bf16.mxu0 %v1733_v12  ;;  %v1738_v15 = vld [vmem:[%s710_s17 + $0x10] ss:$8 sps:$4 sm:$0xff]   ;;  %v1739_v16 = vld [vmem:[%s710_s17 + $0x24] ss:$8 sps:$4 sm:$0xff]   ;;  %v1741_v17 = vld [vmem:[%s710_s17 + $0x20] ss:$8 sps:$4 sm:$0xff]  }
  0x2d   : >> { %v570_v41 = vadd.f32 %v568_v29, %v547_v35  ;;  %v571_v43 = vadd.f32 %v569_v31, %v548_v37  ;;  %777 = vmatpush1.bf16.msra.mxu0 %v1735_v13  ;;  %v1742_v18 = vld [vmem:[%s710_s17 + $0x34] ss:$8 sps:$4 sm:$0xff]   ;;  %v1744_v19 = vld [vmem:[%s710_s17 + $0x30] ss:$8 sps:$4 sm:$0xff]   ;;  %v1888_v20 = vmov 0   ;;  %v1746_v39 = vld [vmem:[%s2091_s23] sm:$0xff]   ;;  %s892_s17 = scalar_lea.vmem %s2339_s8, %s1886_s30 }
  0x2e   : >> { %778 = vmatprep.subr.bf16.mxu0 %v1736_v14  ;;  %808 = vmatprep.mubr.bf16.mxu0 %v1888_v20  ;;  %v1545_v29 = vld [vmem:[%s687_s27] ss:$0 sm:$0xff]  ;;  %v1747_v40 = vld [vmem:[%s2091_s23 + $0x48] sm:$0xff]  }
  0x2f   : >> { %v593_v45 = vadd.f32 %v591_v32, %v570_v41  ;;  %v594_v47 = vadd.f32 %v592_v33, %v571_v43  ;;  %v1546_v33 = vld [vmem:[%s697_s0] ss:$0 sm:$0xff]  ;;  %1614 = vmatpush3.bf16.msra.mxu1 %v1746_v39  ;;  %v1748_v41 = vld [vmem:[%s2091_s23 + $0x8] sm:$0xff]   ;;  %v1750_v43 = vld [vmem:[%s2091_s23 + $0x10] sm:$0xff]   ;;  %s1549_s0 = sshll.u32 %s1886_s30, 1  ;;  %s506_s30 = sadd.s32 1, %s1886_s30  }
  0x30   : >> { %1615 = vmatprep.subr.bf16.mxu1 %v1747_v40  ;;  %s720_s26 = scalar_lea.vmem %s2337_s6, %s1549_s0  ;;  %p503_p11 = scmp.ge.s32.totalorder %s506_s30, 2  }
  0x31   : >> { %v611_v49 = vadd.f32 %v609_v42, %v593_v45  ;;  %v612_v52 = vadd.f32 %v610_v44, %v594_v47  ;;  %779 = vmatpush1.bf16.msra.mxu0 %v1738_v15  ;;  %v1749_v42 = vld [vmem:[%s2091_s23 + $0x50] sm:$0xff]   ;;  %v1751_v44 = vld [vmem:[%s2091_s23 + $0x58] sm:$0xff]   ;;  %v1754_v47 = vld [vmem:[%s2091_s23 + $0x20] sm:$0xff]   ;;  %s1890_s27 = smov (%p503_p11), 64   ;;  %vm1063_vm10 = vcmp.lt.s32.totalorder (%p503_p11), %v2034_v2, 15  ;;  %vm1066_vm11 = vcmp.lt.s32.totalorder (%p503_p11), %v2030_v1, 7 }
  0x32   : >> { %780 = vmatprep.subr.bf16.mxu0 %v1739_v16  ;;  %v1752_v45 = vld [vmem:[%s2091_s23 + $0x18] sm:$0xff]   ;;  %vm1053_vm12 = vcmp.lt.s32.totalorder (%p503_p11), %v2030_v1, 1  ;;  %vm1049_vm13 = vcmp.ge.s32.totalorder (%p503_p11), %v2030_v1, 1  ;;  %vm1892_vm14 = vmmov (%p503_p11), 0   ;;  %vm1281_vm15 = vcmask (%p503_p11), 130048   ;;  %s2363_s0 = scalar_lea.vmem (%p503_p11), [#allocation2], %s2028_s16 }
  0x33   : >> { %v629_v54 = vadd.f32 %v627_v46, %v611_v49  ;;  %v630_v55 = vadd.f32 %v628_v48, %v612_v52  ;;  %1616 = vmatpush3.bf16.msra.mxu1 %v1748_v41  ;;  %v1753_v46 = vld [vmem:[%s2091_s23 + $0x60] sm:$0xff]   ;;  %v1755_v48 = vld [vmem:[%s2091_s23 + $0x68] sm:$0xff]   ;;  %v1759_v52 = vld [vmem:[%s2091_s23 + $0x78] sm:$0xff]   ;;  %vm1284_vm0 = vcmask (%p503_p11), 261120   ;;  %vm1319_vm1 = vcmask (%p503_p11), 392192   ;;  %s1447_s30 = sshll.u32 (%p503_p11), %s2363_s0, 4  ;;  %s2364_s1 = smov (%p503_p11), %s2363_s0  ;;  %s2286_s30 = int_to_ptr.vmem [resolvable:$true] %s1447_s30 }
  0x34   : >> { %1617 = vmatprep.subr.bf16.mxu1 %v1749_v42  ;;  %v1756_v49 = vld [vmem:[%s2091_s23 + $0x28] sm:$0xff]   ;;  %s1895_s0 = smov (%p503_p11), [#allocation2]  }
  0x35   : >> { %v647_v56 = vadd.f32 %v645_v50, %v629_v54  ;;  %v648_v57 = vadd.f32 %v646_v53, %v630_v55  ;;  %781 = vmatpush1.bf16.msra.mxu0 %v1741_v17  ;;  %v1757_v50 = vld [vmem:[%s2091_s23 + $0x70] sm:$0xff]   ;;  %v1760_v53 = vld [vmem:[%s2091_s23 + $0x38] sm:$0xff]   ;;  %v725_v54 = vsub.s32 0, %v2030_v1  ;;  %v721_v55 = vld [vmem:[%s720_s26] sm:$0x3]  ;;  %s1804_s2 = sshll.u32 (%p503_p11), %s1895_s0, 4  ;;  %s1805_s2 = int_to_ptr.vmem [resolvable:$false] %s1804_s2 }
  0x36   : >> { %782 = vmatprep.subr.bf16.mxu0 %v1742_v18  ;;  %p1807_p1 = scmp.lt.s32.totalorder (%p503_p11), %s2286_s30, %s1805_s2 }
  0x37   : >> { %v657_v58 = vadd.f32 %v1544_v51, %v647_v56  ;;  %v658_v59 = vadd.f32 %v1544_v51, %v648_v57  ;;  %1618 = vmatpush3.bf16.msra.mxu1 %v1750_v43  ;;  %v1758_v51 = vld [vmem:[%s2091_s23 + $0x30] sm:$0xff]   ;;  %v729_v56 = vsub.s32 1, %v2030_v1  ;;  %v726_v57 = vrot.slane %v721_v55, %v725_v54  ;;  %s1893_s23 = smov (%p503_p11), 16  }
  0x38   : >> { %1619 = vmatprep.subr.bf16.mxu1 %v1751_v44 }
  0x39   : >> { %v660_v60 = vsel %vm659_vm9, %v657_v58, 0.0  ;;  %v663_v61 = vsel %vm659_vm9, %v658_v59, 0.0  ;;  %783 = vmatpush1.bf16.msra.mxu0 %v1744_v19 }
  0x3a   : >> { %661 = vadd.xlane.f32.xlu0 %v660_v60 }
  0x3b   : >> { %1620 = vmatpush3.bf16.msra.mxu1 %v1752_v45 }
  0x3c   : >> { %1621 = vmatprep.subr.bf16.mxu1 %v1753_v46  ;;  %v1561_v46 = vld [vmem:[%s892_s17] ss:$0 sm:$0xff]  ;;  %s1603_s17 = sshll.u32 (%p503_p11), %s1997_s22, 7  ;;  %s2365_s22 = sand.u32 (%p503_p11), 1, %s1866_s19  }
  0x3d   : > { %s2284_s26 = scalar_lea.hbm (%p503_p11), %s2346_s15, %s1603_s17  ;;  %s1806_s17 = scalar_lea.vmem (%p503_p11), %s1805_s2, 256 }
  0x3e   : >> { %664 = vadd.xlane.f32.xlu0 %v663_v61 }
  0x3f   : >> { %1622 = vmatpush3.bf16.msra.mxu1 %v1754_v47 }
  0x40   : >> { %1623 = vmatprep.subr.bf16.mxu1 %v1755_v48 }
  0x43   : >> { %1624 = vmatpush3.bf16.msra.mxu1 %v1756_v49 }
  0x44   : >> { %1625 = vmatprep.subr.bf16.mxu1 %v1757_v50  ;;  %v1578_v50 = vld [vmem:[%s1037_s25] ss:$0 sm:$0xff] }
  0x47   : >> { %1626 = vmatpush3.bf16.msra.mxu1 %v1758_v51 }
  0x48   : >> { %1627 = vmatprep.subr.bf16.mxu1 %v1759_v52 }
  0x4b   : >> { %1628 = vmatpush3.bf16.msra.mxu1 %v1760_v53 }
  0xc7   : >> { %v662_v62 = vpop.xlane.xlu0 %661 }
  0xc8   : >> { %v667_v63 = vmul.f32 0.015625, %v662_v62 }
  0xca   : >> { %v669_v0 = vsub.f32 %v657_v58, %v667_v63  ;;  %v730_v58 = vrot.slane %v721_v55, %v729_v56 }
  0xcb   : >> { %v665_v3 = vpop.xlane.xlu0 %664 }
  0xcc   : >> { %v668_v6 = vmul.f32 0.015625, %v665_v3  ;;  %v671_v7 = vmul.f32 %v669_v0, %v669_v0 }
  0xce   : >> { %v670_v8 = vsub.f32 %v658_v59, %v668_v6  ;;  %v673_v9 = vsel %vm659_vm9, %v671_v7, 0.0 }
  0xcf   : >> { %674 = vadd.xlane.f32.xlu1 %v673_v9 }
  0xd0   : >> { %v672_v10 = vmul.f32 %v670_v8, %v670_v8 }
  0xd2   : >> { %v676_v11 = vsel %vm659_vm9, %v672_v10, 0.0 }
  0xd3   : >> { %677 = vadd.xlane.f32.xlu1 %v676_v11 }
 0x15c   : >> { %v675_v21 = vpop.xlane.xlu1 %674 }
 0x15d   : >> { %v679_v22 = vmul.f32 0.015625, %v675_v21 }
 0x15f   : >> { %v681_v23 = vadd.f32 1e-06, %v679_v22 }
 0x160   : >> { %v678_v24 = vpop.xlane.xlu1 %677 }
 0x161   : >> { %1761 = vrsqrt.f32 %v681_v23  ;;  %v680_v25 = vmul.f32 0.015625, %v678_v24 }
 0x163   : >> { %v682_v26 = vadd.f32 1e-06, %v680_v25 }
 0x165   : >> { %1763 = vrsqrt.f32 %v682_v26 }
 0x16b   : >> { %v1762_v27 = vpop.eup %1761 }
 0x16c   : >> { %v685_v28 = vmul.f32 %v1762_v27, %v669_v0 }
 0x16e   : >> { %v695_v32 = vmul.f32 %v1545_v29, %v685_v28 }
 0x16f   : >> { %v1764_v30 = vpop.eup %1763 }
 0x170   : >> { %v686_v31 = vmul.f32 %v1764_v30, %v670_v8  ;;  %v705_v35 = vadd.f32 %v1546_v33, %v695_v32 }
 0x172   : >> { %v696_v34 = vmul.f32 %v1545_v29, %v686_v31 }
 0x174   : >> { %v706_v36 = vadd.f32 %v1546_v33, %v696_v34 }
 0x176   : >> { %v707_v37 = vpack.c.bf16 %v706_v36, %v705_v35 }
 0x178   : >> { %1558 = vmatmul.mubr.msk.bf16.vlgmr.msra.gmra.mrb[0].mxu0 %vm659_vm9, %v707_v37 }
 0x24b   : >> { %v810_v59 = vpop.f32.mrb[0].mxu0 }
 0x24c   : >> { %v811_v60 = vadd.f32 %v810_v59, %v726_v57  ;;  %v812_v61 = vpop.f32.mrb[1].mxu0 }
 0x24d   : >> { %v813_v62 = vadd.f32 %v812_v61, %v730_v58  ;;  %v814_v63 = vpop.f32.mrb[2].mxu0  ;;  %v1779_v61 = vld [vmem:[%s2341_s10 + $0x8] sm:$0xff] (%p503_p11)  }
 0x24e   : >> { %v823_v0 = vmul.f32 0.044715, %v811_v60  ;;  %v815_v3 = vadd.f32 %v814_v63, %v726_v57  ;;  %v816_v6 = vpop.f32.mrb[3].mxu0  ;;  %v819_v33 = vmul.f32 0.5, %v811_v60 }
 0x24f   : >> { %v824_v7 = vmul.f32 0.044715, %v813_v62  ;;  %v817_v8 = vadd.f32 %v816_v6, %v730_v58  ;;  %v820_v36 = vmul.f32 0.5, %v813_v62  ;;  %v1781_v6 = vld [vmem:[%s2341_s10 + $0x18] sm:$0xff] (%p503_p11)  }
 0x250   : >> { %v827_v9 = vmul.f32 %v823_v0, %v811_v60  ;;  %v825_v10 = vmul.f32 0.044715, %v815_v3  ;;  %v821_v34 = vmul.f32 0.5, %v815_v3 }
 0x251   : >> { %v826_v11 = vmul.f32 0.044715, %v817_v8  ;;  %v828_v12 = vmul.f32 %v824_v7, %v813_v62  ;;  %v822_v37 = vmul.f32 0.5, %v817_v8 }
 0x252   : >> { %v831_v13 = vmul.f32 %v827_v9, %v811_v60  ;;  %v829_v14 = vmul.f32 %v825_v10, %v815_v3  ;;  %v1782_v9 = vld [vmem:[%s2341_s10 + $0x20] sm:$0xff] (%p503_p11)   ;;  %v1783_v10 = vld [vmem:[%s2341_s10 + $0x28] sm:$0xff] (%p503_p11)  }
 0x253   : >> { %v830_v15 = vmul.f32 %v826_v11, %v817_v8  ;;  %v832_v16 = vmul.f32 %v828_v12, %v813_v62  ;;  %v1784_v11 = vld [vmem:[%s2341_s10 + $0x30] sm:$0xff] (%p503_p11)   ;;  %v1785_v12 = vld [vmem:[%s2341_s10 + $0x38] sm:$0xff] (%p503_p11)  }
 0x254   : >> { %v833_v17 = vmul.f32 %v829_v14, %v815_v3  ;;  %v835_v18 = vadd.f32 %v831_v13, %v811_v60  ;;  %v1778_v60 = vld [vmem:[%s2341_s10] sm:$0xff] (%p503_p11)   ;;  %v1787_v14 = vld [vmem:[%s2341_s10 + $0x48] sm:$0xff] (%p503_p11)  }
 0x255   : >> { %v834_v19 = vmul.f32 %v830_v15, %v817_v8  ;;  %v836_v20 = vadd.f32 %v832_v16, %v813_v62  ;;  %v1786_v13 = vld [vmem:[%s2341_s10 + $0x40] sm:$0xff] (%p503_p11)   ;;  %v1788_v15 = vld [vmem:[%s2341_s10 + $0x50] sm:$0xff] (%p503_p11)   ;;  %v1789_v16 = vld [vmem:[%s2341_s10 + $0x58] sm:$0xff] (%p503_p11)  }
 0x256   : >> { %v837_v21 = vadd.f32 %v833_v17, %v815_v3  ;;  %v839_v22 = vmul.f32 0.7978846, %v835_v18 }
 0x257   : >> { %v838_v23 = vadd.f32 %v834_v19, %v817_v8  ;;  %v840_v24 = vmul.f32 0.7978846, %v836_v20 }
 0x258   : >> { %v841_v25 = vmul.f32 0.7978846, %v837_v21  ;;  %1765 = vtanh.f32 %v839_v22 }
 0x259   : >> { %v842_v26 = vmul.f32 0.7978846, %v838_v23  ;;  %1767 = vtanh.f32 %v840_v24 }
 0x25a   : >> { %1769 = vtanh.f32 %v841_v25 }
 0x25b   : >> { %1771 = vtanh.f32 %v842_v26 }
 0x262   : >> { %v1766_v27 = vpop.eup %1765 }
 0x263   : >> { %v1768_v28 = vpop.eup %1767  ;;  %v847_v29 = vadd.f32 1.0, %v1766_v27 }
 0x264   : >> { %v1770_v30 = vpop.eup %1769  ;;  %v848_v31 = vadd.f32 1.0, %v1768_v28  ;;  %v1790_v28 = vld [vmem:[%s2344_s13] sm:$0xff] (%p503_p11)  }
 0x265   : >> { %v1772_v32 = vpop.eup %1771  ;;  %v849_v35 = vadd.f32 1.0, %v1770_v30  ;;  %v851_v39 = vmul.f32 %v847_v29, %v819_v33  ;;  %v1891_v29 = vmov (%p503_p11), 0.0   ;;  %v1791_v30 = vld [vmem:[%s2344_s13 + $0x8] sm:$0xff] (%p503_p11)  }
 0x266   : >> { %v850_v38 = vadd.f32 1.0, %v1772_v32  ;;  %v852_v41 = vmul.f32 %v848_v31, %v820_v36  ;;  %1643 = vmatprep.subr.bf16.mxu1 (%p503_p11), %v1891_v29  ;;  %v1579_v31 = vld [vmem:[%s2342_s11] ss:$0 sm:$0xff] (%p503_p11) }
 0x267   : >> { %v853_v40 = vmul.f32 %v849_v35, %v821_v34 }
 0x268   : >> { %v854_v42 = vmul.f32 %v850_v38, %v822_v37 }
 0x269   : >> { %v855_v43 = vpack.c.bf16 %v853_v40, %v851_v39 }
 0x26a   : >> { %v856_v44 = vpack.c.bf16 %v854_v42, %v852_v41 }
 0x26c   : >> { %1028 = vmatprep.mubr.bf16.mxu1 %v856_v44 }
 0x26d   : >> { %1029 = vmatmul.mubr.bf16.vlgmr.msra.gmra.mrb[0].mxu1 %v855_v43 }
 0x26e   : > { %1644 = vmatpush3.bf16.msra.mxu1 (%p503_p11), %v1790_v28  ;;  %1649 = vmatprep.mubr.msk.bf16.mxu1 (%p503_p11), %vm1892_vm14, %v1891_v29 }
 0x26f   : > { %1645 = vmatprep.subr.bf16.mxu1 (%p503_p11), %v1891_v29 }
 0x272   : > { %1646 = vmatpush3.bf16.msra.mxu1 (%p503_p11), %v1791_v30 }
 0x273   : > { %1647 = vmatprep.subr.bf16.mxu1 (%p503_p11), %v1891_v29 }
 0x340   : >> { %v1629_v45 = vpop.f32.mrb[0].mxu1 }
 0x341   : >> { %v1630_v47 = vpop.f32.mrb[1].mxu1 }
 0x342   : >> { %v1631_v48 = vadd.f32 %v1630_v47, %v1629_v45  ;;  %v1632_v49 = vpop.f32.mrb[2].mxu1 }
 0x343   : >> { %v1633_v51 = vpop.f32.mrb[3].mxu1 }
 0x344   : >> { %v1031_v52 = vadd.f32 %v1631_v48, %v1561_v46  ;;  %v1634_v53 = vadd.f32 %v1633_v51, %v1632_v49  ;;  %v1792_v48 = vld [vmem:[%s2344_s13 + $0x10] sm:$0xff] (%p503_p11)  }
 0x345   : > { %1648 = vmatpush3.bf16.msra.mxu1 (%p503_p11), %v1792_v48 }
 0x346   : >> { %v1045_v54 = vmul.f32 %v1578_v50, %v1031_v52  ;;  %v1034_v55 = vadd.f32 %v1634_v53, %v1561_v46  ;;  %1653 = vmatprep.subr.bf16.mxu1 (%p503_p11), %v1891_v29 }
 0x347   : > { %505 = sbr.rel (!%p503_p11) target bundleno = 32 (0x20), region = 131 }
 0x348   : >> { %v2151_v4 = vadd.f32 %v1882_v4, %v1045_v54   ;;  %v1046_v57 = vmul.f32 %v1578_v50, %v1034_v55 }
 0x34a   : >> { %v2359_v56 = vmov %v2151_v4  ;;  %v2154_v5 = vadd.f32 %v1878_v5, %v1046_v57  }
 0x34b   : >> { %v2362_v4 = vmov %v2359_v56  ;;  %v1064_v62 = vrot.slane (%p503_p11), %v2359_v56, 1  ;;  %v1051_v17 = vrot.slane (%p503_p11), %v2359_v56, 7 }
 0x34c   : >> { %v2360_v58 = vmov %v2154_v5  ;;  %v1889_v4 = vmov (%p503_p11), 0  }
 0x34d   : >> { %v2361_v5 = vmov %v2360_v58  ;;  %v1773_v59 = vpack.i.bf16 (%p503_p11), %v2360_v58, %v2359_v56  ;;  %1194 = vmatprep.subr.bf16.mxu0 (%p503_p11), %v1889_v4  ;;  %v1065_v63 = vrot.slane (%p503_p11), %v2360_v58, 1  ;;  %v1052_v18 = vrot.slane (%p503_p11), %v2360_v58, 7 }
 0x34e   : > { %1195 = vmatpush1.bf16.msra.mxu0 %v1778_v60  ;;  %v1780_v5 = vld [vmem:[%s2341_s10 + $0x10] sm:$0xff]  }
 0x34f   : > { %1774 = vrot.lane.b32.xlu0 %v1773_v59, %s1890_s27  ;;  %1196 = vmatprep.subr.bf16.mxu0 %v1889_v4  ;;  %v1067_v0 = vsel %vm1066_vm11, %v1064_v62, %v1065_v63  ;;  %v1068_v3 = vsel %vm1066_vm11, %v1065_v63, %v1064_v62  ;;  %v1055_v19 = vsel %vm1053_vm12, %v1052_v18, %v1051_v17  ;;  %s1894_s27 = smov 32  }
 0x350   : > { %v1074_v7 = vsel %vm1063_vm10, %v1068_v3, 0.0  ;;  %v1054_v21 = vsel %vm1053_vm12, %v1051_v17, %v1052_v18  ;;  %v1060_v22 = vsel %vm1049_vm13, %v1055_v19, 0.0 }
 0x351   : > { %v1087_v8 = vpack.c.bf16 %v1074_v7, %v1067_v0 }
 0x352   : > { %1197 = vmatpush1.bf16.msra.mxu0 %v1779_v61 }
 0x353   : > { %1198 = vmatprep.subr.bf16.mxu0 %v1889_v4  ;;  %1592 = vmatprep.mubr.msk.bf16.mxu0 %vm659_vm9, %v1087_v8  ;;  %v1793_v8 = vld [vmem:[%s2343_s12] sm:$0xff]  }
 0x356   : > { %1199 = vmatpush1.bf16.msra.mxu0 %v1780_v5 }
 0x357   : > { %1200 = vmatprep.subr.bf16.mxu0 %v1889_v4 }
 0x35a   : > { %1201 = vmatpush1.bf16.msra.mxu0 %v1781_v6 }
 0x35b   : > { %1202 = vmatprep.subr.bf16.mxu0 %v1889_v4 }
 0x35e   : > { %1203 = vmatpush1.bf16.msra.mxu0 %v1782_v9 }
 0x35f   : > { %1204 = vmatprep.subr.bf16.mxu0 %v1889_v4 }
 0x362   : > { %1205 = vmatpush1.bf16.msra.mxu0 %v1783_v10  ;;  %v1794_v10 = vld [vmem:[%s2343_s12 + $0x8] sm:$0xff]  }
 0x363   : > { %1206 = vmatprep.subr.bf16.mxu0 %v1889_v4 }
 0x366   : > { %1207 = vmatpush1.bf16.msra.mxu0 %v1784_v11 }
 0x367   : > { %1208 = vmatprep.subr.bf16.mxu0 %v1889_v4 }
 0x36a   : > { %1209 = vmatpush1.bf16.msra.mxu0 %v1785_v12 }
 0x36b   : > { %1210 = vmatprep.subr.bf16.mxu0 %v1889_v4 }
 0x36e   : > { %1211 = vmatpush1.bf16.msra.mxu0 %v1786_v13  ;;  %v1795_v13 = vld [vmem:[%s2343_s12 + $0x10] sm:$0xff]  }
 0x36f   : > { %1212 = vmatprep.subr.bf16.mxu0 %v1889_v4 }
 0x372   : > { %1213 = vmatpush1.bf16.msra.mxu0 %v1787_v14 }
 0x373   : > { %1214 = vmatprep.subr.bf16.mxu0 %v1889_v4 }
 0x376   : > { %1215 = vmatpush1.bf16.msra.mxu0 %v1788_v15 }
 0x377   : > { %1216 = vmatprep.subr.bf16.mxu0 %v1889_v4 }
 0x37a   : > { %1217 = vmatpush1.bf16.msra.mxu0 %v1789_v16 }
 0x3c1   : > { %v1775_v20 = vpop.permute.xlu0 %1774 }
 0x3c2   : > { %v1777_v23 = vunpack.i.h.bf16 %v1775_v20  ;;  %v1776_v24 = vunpack.i.l.bf16 %v1775_v20 }
 0x3c4   : > { %v1084_v25 = vsel %vm659_vm9, %v1060_v22, %v1776_v24  ;;  %v1085_v26 = vsel %vm659_vm9, %v1054_v21, %v1777_v23  ;;  %v1601_v21 = vld [vmem:[%s2345_s14] ss:$0 sm:$0xff] }
 0x3c5   : > { %v1086_v27 = vpack.c.bf16 %v1085_v26, %v1084_v25 }
 0x3c7   : > { %1227 = vmatmul.mubr.bf16.vlgmr.msra.gmra.mrb[0].mxu0 %v1086_v27 }
 0x49a   : > { %v1228_v32 = vpop.f32.mrb[0].mxu0 }
 0x49b   : > { %v1229_v33 = vadd.f32 %v1579_v31, %v1228_v32  ;;  %v1230_v34 = vpop.f32.mrb[1].mxu0 }
 0x49c   : > { %v1231_v35 = vpop.f32.mrb[2].mxu0 }
 0x49d   : > { %v1237_v36 = vmul.f32 0.044715, %v1229_v33  ;;  %v1232_v37 = vadd.f32 %v1579_v31, %v1231_v35  ;;  %v1233_v38 = vpop.f32.mrb[3].mxu0  ;;  %v1235_v50 = vmul.f32 0.5, %v1229_v33 }
 0x49f   : > { %v1239_v39 = vmul.f32 %v1237_v36, %v1229_v33  ;;  %v1238_v40 = vmul.f32 0.044715, %v1232_v37  ;;  %v1236_v53 = vmul.f32 0.5, %v1232_v37 }
 0x4a1   : > { %v1241_v41 = vmul.f32 %v1239_v39, %v1229_v33  ;;  %v1240_v42 = vmul.f32 %v1238_v40, %v1232_v37 }
 0x4a3   : > { %v1243_v43 = vadd.f32 %v1241_v41, %v1229_v33  ;;  %v1242_v44 = vmul.f32 %v1240_v42, %v1232_v37 }
 0x4a5   : > { %v1245_v45 = vmul.f32 0.7978846, %v1243_v43  ;;  %v1244_v46 = vadd.f32 %v1242_v44, %v1232_v37 }
 0x4a7   : > { %1796 = vtanh.f32 %v1245_v45  ;;  %v1246_v47 = vmul.f32 0.7978846, %v1244_v46 }
 0x4a9   : > { %1798 = vtanh.f32 %v1246_v47 }
 0x4b1   : > { %v1797_v49 = vpop.eup %1796 }
 0x4b2   : > { %v1249_v51 = vadd.f32 1.0, %v1797_v49 }
 0x4b3   : > { %v1799_v52 = vpop.eup %1798 }
 0x4b4   : > { %v1250_v54 = vadd.f32 1.0, %v1799_v52  ;;  %v1251_v55 = vmul.f32 %v1249_v51, %v1235_v50 }
 0x4b6   : > { %v1252_v56 = vmul.f32 %v1250_v54, %v1236_v53  ;;  %v1259_v57 = vrot.slane %v1251_v55, 1  ;;  %v1253_v59 = vrot.slane %v1251_v55, 7 }
 0x4b8   : > { %1269 = vrot.lane.b32.xlu0 %v1252_v56, %s1893_s23  ;;  %v1260_v58 = vrot.slane %v1252_v56, 1  ;;  %v1254_v4 = vrot.slane %v1252_v56, 7 }
 0x4ba   : > { %v1262_v60 = vsel %vm1066_vm11, %v1260_v58, %v1259_v57  ;;  %v1261_v61 = vsel %vm1066_vm11, %v1259_v57, %v1260_v58  ;;  %v1255_v5 = vsel %vm1053_vm12, %v1253_v59, %v1254_v4  ;;  %v1256_v62 = vsel %vm1053_vm12, %v1254_v4, %v1253_v59 }
 0x4bb   : > { %v1264_v63 = vsel %vm1063_vm10, %v1262_v60, 0.0  ;;  %v1257_v11 = vsel %vm1049_vm13, %v1256_v62, 0.0 }
 0x4bc   : > { %1277 = vrot.lane.b32.xlu1 %v1264_v63, %s1894_s27  ;;  %1275 = vrot.lane.b32.xlu0 %v1261_v61, %s1894_s27  ;;  %s1800_s27 = scalar_lea.vmem %s2286_s30, 128 }
 0x4bd   : > { %p1801_p12 = scmp.ne.s32.totalorder %s2286_s30, %s1800_s27  ;;  %p1808_p2 = scmp.lt.s32.totalorder %s1806_s17, %s1800_s27 }
 0x4bf   : > { %p1802_p13 = pnand %p1801_p12, %p2014_p5  ;;  %p1809_p3 = por %p1808_p2, %p1807_p1 }
 0x4c0   : > { %1267 = vrot.lane.b32.xlu1 %v1251_v55, %s1893_s23  ;;  %s1434_s23 = scalar_lea.sflag [#allocation3], %s2365_s22 }
 0x4c1   : > { %p1803_p0 = pneg %p1802_p13 }
 0x4c3   : > { %p1810_p4 = pnand %p1809_p3, %p1803_p0 }
 0x52a   : > { %v1270_v0 = vpop.permute.xlu0 %1269 }
 0x52b   : > { %v1283_v3 = vsel %vm1281_vm15, %v1255_v5, %v1270_v0 }
 0x52e   : > { %v1278_v6 = vpop.permute.xlu1 %1277  ;;  %v1276_v14 = vpop.permute.xlu0 %1275 }
 0x52f   : > { %v1286_v7 = vsel %vm1284_vm0, %v1283_v3, %v1278_v6 }
 0x530   : > { %v1294_v9 = vpack.c.bf16 %v1286_v7, %v1286_v7 }
 0x532   : > { %1650 = vmatmul.mubr.msk.bf16.vlgmr.msra.gmra.mrb[0].mxu1 %vm1319_vm1, %v1294_v9  ;;  %v1268_v2 = vpop.permute.xlu1 %1267 }
 0x533   : > { %1654 = vmatpush3.bf16.msra.mxu1 %v1793_v8  ;;  %1659 = vmatprep.mubr.msk.bf16.mxu1 %vm1892_vm14, %v1891_v29  ;;  %v1282_v12 = vsel %vm1281_vm15, %v1257_v11, %v1268_v2 }
 0x534   : > { %1655 = vmatprep.subr.bf16.mxu1 %v1891_v29  ;;  %v1285_v15 = vsel %vm1284_vm0, %v1282_v12, %v1276_v14 }
 0x535   : > { %v1287_v16 = vpack.c.bf16 %v1285_v15, %v1285_v15 }
 0x537   : > { %1656 = vmatpush3.bf16.msra.mxu1 %v1794_v10 }
 0x538   : > { %1657 = vmatprep.subr.bf16.mxu1 %v1891_v29 }
 0x53b   : > { %1658 = vmatpush3.bf16.msra.mxu1 %v1795_v13 }
 0x53e   : > { %1660 = vmatmul.mubr.msk.bf16.vlgmr.msra.gmra.mrb[4].mxu1 %vm1319_vm1, %v1287_v16 }
 0x605   : > { %v1357_v1 = vpop.f32.mrb[0].mxu1 }
 0x606   : > { %v1651_v17 = vpop.f32.mrb[1].mxu1 }
 0x607   : > { %v1360_v18 = vpop.f32.mrb[2].mxu1 }
 0x608   : > { %v1652_v19 = vpop.f32.mrb[3].mxu1 }
 0x611   : > { %v1418_v20 = vpop.f32.mrb[4].mxu1 }
 0x612   : > { %v1419_v22 = vadd.f32 %v1418_v20, %v1357_v1  ;;  %v1661_v23 = vpop.f32.mrb[5].mxu1 }
 0x613   : > { %v1421_v24 = vpop.f32.mrb[6].mxu1 }
 0x614   : > { %v1431_v25 = vadd.f32 %v1601_v21, %v1419_v22  ;;  %v1662_v26 = vpop.f32.mrb[7].mxu1 }
 0x616   : > { %1432 = vst.msk [vmem:[%s2364_s1] sm:$0xff] %vm1284_vm0, %v1431_v25 }
 0x617   : > { %1813 = shalt.err (!%p1810_p4)
}
 0x618   : > { %s1814_s1 = scalar_lea.hbm %s2284_s26, 128  ;;  %s1818_s25 = scalar_lea.hbm %s2346_s15, 256 }
 0x619   : > { %p1815_p7 = scmp.ne.s32.totalorder %s2284_s26, %s1814_s1  ;;  %p1819_p10 = scmp.lt.u32.totalorder %s2284_s26, %s2346_s15 }
 0x61a   : > { %p1820_p11 = scmp.lt.u32.totalorder %s1818_s25, %s1814_s1  ;;  %p1822_p13 = scmp.lt.u32.totalorder %s1814_s1, %s2284_s26 }
 0x61b   : > { %p1816_p8 = pnand %p1815_p7, %p2014_p5 }
 0x61c   : > { %p1821_p12 = por %p1820_p11, %p1819_p10 }
 0x61d   : > { %p1817_p9 = pneg %p1816_p8 }
 0x61e   : > { %p1823_p0 = por %p1822_p13, %p1821_p12 }
 0x620   : > { %p1824_p1 = pnand %p1823_p0, %p1817_p9 }
 0x622   : > { %1827 = shalt.err (!%p1824_p1)
}
 0x623   : > { %1663 = dma.vmem_to_hbm [thread:$0]  (%p2014_p5), %s2286_s30, 128, %s2284_s26, %s1434_s23  }
 0x624 PF: > { %p1669_p2 = scmp.ge.s32.totalorder %s1874_s21, 2  ;;  %s1459_s27 = sand.u32 1, %s1862_s18  }
 0x625   : > { %s1460_s0 = scalar_lea.sflag [#allocation3], %s1459_s27 }
 0x626   : > { %p1666_p3 = pnand %p1669_p2, %p2018_p6 }
 0x628   : > { %1857 = dma.done.wait (!%p1666_p3), %s1460_s0, 128  }
 0x629   : > { %1859 = vsyncadd (!%p1666_p3), %s1460_s0, 4294967168  ;;  %s2366_s17 = sld [smem:[#allocation5_spill]]  ;;  %s2367_s20 = sld [smem:[#allocation6_spill]] }
 0x62a   : > { %p25_p4 = scmp.ge.s32.totalorder %s2001_s24, 4   ;;  %s2368_s18 = smov %s1866_s19 }
 0x62b   : > { %s2370_s21 = smov %s2001_s24 }
 0x62c   :  { %27 = sbr.rel (!%p25_p4) target bundleno = 7 (0x7), region = 142 }
 0x62f   : > { %s2369_s19 = smov %s2366_s17 }
 0x633   :  { %1465 = vsyncpa [#allocation3], 1 }
 0x634   :  { %1467 = vsyncpa [#allocation3 + $0x1], 1 }

// kernel: dvae_encoder_forward.2
= control target key start
LH: loop header
LB: loop body
LE: loop exit
PB: predicated region body
PF: predicated region fallthrough
CT: control target
= control target key end

     0   :  { %s2370_s30 = smov 0   ;;  %s2707_s0 = inlined_call_operand.vmem [shape: bf16[2,16,100], index: 0, kind: input, shape index: {}]   ;;  %s2708_s1 = inlined_call_operand.vmem [shape: f32[2,16,1], index: 1, kind: input, shape index: {}]   ;;  %s2709_s2 = inlined_call_operand.vmem [shape: bf16[100,32], index: 2, kind: input, shape index: {}]   ;;  %s2710_s3 = inlined_call_operand.vmem [shape: f32[1,32], index: 3, kind: input, shape index: {}]   ;;  %s2711_s4 = inlined_call_operand.vmem [shape: bf16[20,96,64], index: 4, kind: input, shape index: {}]   ;;  %s2712_s5 = inlined_call_operand.vmem [shape: f32[20,1,64], index: 5, kind: input, shape index: {}]   ;;  %s2713_s6 = inlined_call_operand.vmem [shape: bf16[20,32,64], index: 6, kind: input, shape index: {}]   ;;  %s2714_s7 = inlined_call_operand.vmem [shape: f32[20,1,64], index: 7, kind: input, shape index: {}]   ;;  %s2715_s8 = inlined_call_operand.vmem [shape: bf16[32,64], index: 8, kind: input, shape index: {}]   ;;  %s2716_s9 = inlined_call_operand.vmem [shape: bf16[2,16,64], index: 9, kind: output, shape index: {}]  }
   0x1 LB: > { %s1720_s10 = sadd.s32 4294967295, %s2289_s30   ;;  %p1724_p0 = scmp.ge.s32.totalorder %s2289_s30, 1  ;;  %s2289_s30 = sphi %s2370_s30, %s19_s30  }
   0x2   : > { %p297_p1 = scmp.lt.s32.totalorder %s2289_s30, 3 }
   0x4   : > { %p298_p2 = pnand %p1724_p0, %p297_p1 }
   0x5   : > { %v354_v0 = vlaneseq (!%p298_p2)  ;;  %v2124_v1 = vld [vmem:[%s2709_s2] sm:$0xff] (!%p298_p2)   ;;  %v2311_v2 = vmov (!%p298_p2), 0.0   ;;  %v2125_v4 = vld [vmem:[%s2709_s2 + $0x8] sm:$0xff] (!%p298_p2)   ;;  %vm2312_vm0 = vmmov (!%p298_p2), 0   ;;  %p338_p3 = scmp.lt.s32.totalorder (!%p298_p2), %s1720_s10, 1  ;;  %v2126_v6 = vld [vmem:[%s2709_s2 + $0x10] sm:$0xff] (!%p298_p2)  }
   0x6   : > { %301 = sbr.rel (%p298_p2) target bundleno = 3381 (0xd35), region = 56  ;;  %1945 = vmatprep.subr.bf16.mxu0 (!%p298_p2), %v2311_v2  ;;  %1959 = vmatprep.mubr.msk.bf16.mxu0 (!%p298_p2), %vm2312_vm0, %v2311_v2  ;;  %v2127_v7 = vld [vmem:[%s2709_s2 + $0x18] sm:$0xff] (!%p298_p2)   ;;  %v2128_v8 = vld [vmem:[%s2709_s2 + $0x20] sm:$0xff] (!%p298_p2)   ;;  %v2129_v9 = vld [vmem:[%s2709_s2 + $0x28] sm:$0xff] (!%p298_p2)   ;;  %vm427_vm1 = vcmask (!%p298_p2), 1041408   ;;  %vm423_vm2 = vcmask (!%p298_p2), 818176  }
   0x7   : > { %v2382_v3 = vshrl.u32 (!%p298_p2), %v354_v0, 7  ;;  %1946 = vmatpush3.bf16.msra.mxu0 (!%p298_p2), %v2124_v1  ;;  %v2130_v10 = vld [vmem:[%s2709_s2 + $0x30] ss:$0 sps:$4 sm:$0x33] (!%p298_p2)   ;;  %v1731_v13 = vld [vmem:[%s2710_s3] ss:$0 sm:$0xff] (!%p298_p2) }
   0x8   : > { %1947 = vmatprep.subr.bf16.mxu0 (!%p298_p2), %v2311_v2  ;;  %v429_v11 = vsel (!%p298_p2), %vm427_vm1, %v2130_v10, 0  ;;  %v2429_v30 = vmov (!%p298_p2), 0.0   ;;  %v2431_v31 = vmov (!%p298_p2), 0.0  }
   0x9   : > { %v2389_v5 = vadd.s32 (!%p298_p2), 8, %v2382_v3 }
   0xb   : > { %1948 = vmatpush3.bf16.msra.mxu0 (!%p298_p2), %v2125_v4 }
   0xc   : > { %1949 = vmatprep.subr.bf16.mxu0 (!%p298_p2), %v2311_v2 }
   0xd   : > { %s2720_s10 = smov (!%p338_p3, %s1720_s10), 1 }
   0xe   : > { %s1883_s17 = sshll.u32 %s2720_s10, 3  ;;  %s1884_s18 = sshll.u32 %s2720_s10, 4 }
   0xf   : > { %1950 = vmatpush3.bf16.msra.mxu0 %v2126_v6  ;;  %s342_s23 = scalar_lea.vmem %s2707_s0, %s1883_s17  ;;  %s2406_s26 = scalar_lea.vmem %s2708_s1, %s1884_s18 }
  0x10   : > { %1951 = vmatprep.subr.bf16.mxu0 %v2311_v2  ;;  %s2412_s29 = scalar_lea.vmem %s2716_s9, %s1883_s17  ;;  %v2131_v12 = vld [vmem:[%s342_s23] sm:$0xff]   ;;  %s2437_s18 = smov 0  }
  0x13   : > { %1952 = vmatpush3.bf16.msra.mxu0 %v2127_v7 }
  0x14   : > { %1953 = vmatprep.subr.bf16.mxu0 %v2311_v2 }
  0x17   : > { %1954 = vmatpush3.bf16.msra.mxu0 %v2128_v8 }
  0x18   : > { %1955 = vmatprep.subr.bf16.mxu0 %v2311_v2 }
  0x1b   : > { %1956 = vmatpush3.bf16.msra.mxu0 %v2129_v9 }
  0x1c   : > { %1957 = vmatprep.subr.bf16.mxu0 %v2311_v2 }
  0x1f   : > { %1958 = vmatpush3.bf16.msra.mxu0 %v429_v11 }
  0x22   : > { %1960 = vmatmul.mubr.msk.bf16.vlgmr.msra.gmra.mrb[0].mxu0 %vm423_vm2, %v2131_v12 }
  0xf5   : > { %v465_v14 = vpop.f32.mrb[0].mxu0 }
  0xf6   : > { %v466_v15 = vadd.f32 %v1731_v13, %v465_v14  ;;  %v1961_v16 = vpop.f32.mrb[1].mxu0 }
  0xf7   : > { %v468_v17 = vpop.f32.mrb[2].mxu0 }
  0xf8   : > { %v1741_v18 = vmul.f32 -1.442695, %v466_v15  ;;  %v469_v19 = vadd.f32 %v1731_v13, %v468_v17  ;;  %v1962_v20 = vpop.f32.mrb[3].mxu0 }
  0xfa   : > { %2132 = vpow2.f32 %v1741_v18  ;;  %v1742_v21 = vmul.f32 -1.442695, %v469_v19 }
  0xfc   : > { %2134 = vpow2.f32 %v1742_v21 }
 0x104   : > { %v2133_v22 = vpop.eup %2132 }
 0x105   : > { %v478_v23 = vadd.f32 1.0, %v2133_v22 }
 0x106   : > { %v2135_v24 = vpop.eup %2134 }
 0x107   : > { %2136 = vrcp.f32 %v478_v23  ;;  %v479_v25 = vadd.f32 1.0, %v2135_v24 }
 0x109   : > { %2138 = vrcp.f32 %v479_v25 }
 0x111   : > { %v2137_v26 = vpop.eup %2136 }
 0x112   : > { %v484_v27 = vmul.f32 %v2137_v26, %v466_v15  }
 0x113   : > { %v2139_v28 = vpop.eup %2138 }
 0x114   : > { %v485_v29 = vmul.f32 %v2139_v28, %v469_v19  }
 0x115 LB: >> { %v2140_v32 = vpack.i.bf16 %v2301_v29, %v2305_v27  ;;  %v512_v33 = vrot.slane %v2305_v27, 1  ;;  %vm514_vm3 = vcmp.lt.s32.totalorder %v2382_v3, 7  ;;  %v2313_v34 = vmov 0.0   ;;  %s1886_s19 = smul.u32 192, %s2309_s18  ;;  %s2314_s20 = smov 32   ;;  %s2309_s18 = sphi %s2437_s18, %s491_s18   ;;  %v2305_v27 = vphi %v484_v27, %v1492_v27   ;;  %v2301_v29 = vphi %v485_v29, %v1493_v29   ;;  %v2297_v31 = vphi %v2431_v31, %v2718_v31   ;;  %v2293_v30 = vphi %v2429_v30, %v2717_v30  }
 0x116   : >> { %1963 = vmatprep.subr.bf16.mxu0 %v2313_v34  ;;  %1979 = vmatprep.subr.bf16.mxu1 %v2313_v34  ;;  %vm511_vm4 = vcmp.lt.s32.totalorder %v2389_v5, 15  ;;  %v513_v35 = vrot.slane %v2301_v29, 1  ;;  %vm2315_vm5 = vmmov 0   ;;  %s2316_s24 = smov 64   ;;  %v499_v46 = vrot.slane %v2305_v27, 7  ;;  %s1743_s25 = sshll.u32 %s2309_s18, 2 }
 0x117   : >> { %2141 = vrot.lane.b32.xlu0 %v2140_v32, %s2314_s20  ;;  %s2467_s23 = scalar_lea.vmem %s2711_s4, %s1886_s19  ;;  %1975 = vmatprep.mubr.msk.bf16.mxu0 %vm2315_vm5, %v2313_v34  ;;  %v500_v47 = vrot.slane %v2301_v29, 7  ;;  %vm501_vm6 = vcmp.lt.s32.totalorder %v2382_v3, 1  ;;  %vm497_vm7 = vcmp.ge.s32.totalorder %v2382_v3, 1  ;;  %vm539_vm8 = vcmask 261120   ;;  %s2503_s10 = scalar_lea.vmem %s2712_s5, %s1743_s25 }
 0x118   : >> { %v515_v36 = vsel %vm514_vm3, %v512_v33, %v513_v35  ;;  %v516_v37 = vsel %vm514_vm3, %v513_v35, %v512_v33  ;;  %1983 = vmatprep.mubr.msk.bf16.mxu1 %vm2315_vm5, %v2313_v34  ;;  %v2180_v39 = vld [vmem:[%s2467_s23] sm:$0xff]   ;;  %v2181_v41 = vld [vmem:[%s2467_s23 + $0x8] sm:$0xff]   ;;  %v2182_v42 = vld [vmem:[%s2467_s23 + $0x10] sm:$0xff]   ;;  %vm542_vm9 = vcmask 523264   ;;  %vm605_vm10 = vcmask 785408   ;;  %s1888_s11 = sshll.u32 %s2309_s18, 6  ;;  %s2534_s19 = scalar_lea.vmem %s2714_s7, %s1743_s25 }
 0x119   : >> { %v522_v38 = vsel %vm511_vm4, %v516_v37, 0.0  ;;  %1964 = vmatpush3.bf16.msra.mxu0 %v2180_v39  ;;  %v2183_v43 = vld [vmem:[%s2467_s23 + $0x18] sm:$0xff]   ;;  %v2184_v44 = vld [vmem:[%s2467_s23 + $0x20] sm:$0xff]   ;;  %v2185_v45 = vld [vmem:[%s2467_s23 + $0x28] sm:$0xff]   ;;  %v503_v49 = vsel %vm501_vm6, %v500_v47, %v499_v46  ;;  %v502_v52 = vsel %vm501_vm6, %v499_v46, %v500_v47  ;;  %s2510_s14 = scalar_lea.vmem %s2713_s6, %s1888_s11  ;;  %s2317_s15 = smov 96   ;;  %vm770_vm11 = vcmp.lt.s32.totalorder %v2382_v3, 6 }
 0x11a   : >> { %v2145_v40 = vpack.i.bf16 %v522_v38, %v515_v36  ;;  %1965 = vmatprep.subr.bf16.mxu0 %v2313_v34  ;;  %v508_v53 = vsel %vm497_vm7, %v503_v49, 0.0  ;;  %v1746_v62 = vld [vmem:[%s2503_s10] ss:$0 sm:$0xff]  ;;  %v2187_v9 = vld [vmem:[%s2510_s14 + $0x8] sm:$0xff]   ;;  %v2188_v25 = vld [vmem:[%s2467_s23 + $0x30] sm:$0xff]   ;;  %vm767_vm12 = vcmp.lt.s32.totalorder %v2389_v5, 14 }
 0x11b   : >> { %v2186_v4 = vld [vmem:[%s2510_s14] sm:$0xff]   ;;  %v2189_v26 = vld [vmem:[%s2467_s23 + $0x38] sm:$0xff]   ;;  %v2191_v32 = vld [vmem:[%s2467_s23 + $0x48] sm:$0xff]   ;;  %vm757_vm13 = vcmp.lt.s32.totalorder %v2382_v3, 2  ;;  %vm753_vm14 = vcmp.ge.s32.totalorder %v2382_v3, 2  ;;  %vm1010_vm15 = vcmp.lt.s32.totalorder %v2382_v3, 4 }
 0x11c   : >> { %2146 = vrot.lane.b32.xlu0 %v2145_v40, %s2316_s24  ;;  %1980 = vmatpush3.bf16.msra.mxu1 %v2186_v4  ;;  %v2190_v28 = vld [vmem:[%s2467_s23 + $0x40] sm:$0xff]   ;;  %v2192_v35 = vld [vmem:[%s2467_s23 + $0x50] sm:$0xff]   ;;  %vm1020_vm1 = vcmp.lt.s32.totalorder %v2389_v5, 12  ;;  %vm1006_vm2 = vcmp.ge.s32.totalorder %v2382_v3, 4  ;;  %s491_s18 = sadd.s32 1, %s2309_s18  }
 0x11d   : >> { %1966 = vmatpush3.bf16.msra.mxu0 %v2181_v41  ;;  %1981 = vmatprep.subr.bf16.mxu1 %v2313_v34  ;;  %v1758_v33 = vld [vmem:[%s2534_s19] ss:$0 sm:$0xff]  ;;  %p488_p4 = scmp.ge.s32.totalorder %s491_s18, 5  }
 0x11e   : >> { %1967 = vmatprep.subr.bf16.mxu0 %v2313_v34  ;;  %v2262_v3 = vld [vmem:[%s2715_s8 + $0x8] sm:$0xff] (%p488_p4)  }
 0x120   : >> { %1982 = vmatpush3.bf16.msra.mxu1 %v2187_v9 }
 0x121   : >> { %1968 = vmatpush3.bf16.msra.mxu0 %v2182_v42  ;;  %1987 = vmatprep.subr.bf16.mxu1 %v2313_v34 }
 0x122   : >> { %1969 = vmatprep.subr.bf16.mxu0 %v2313_v34 }
 0x125   : >> { %1970 = vmatpush3.bf16.msra.mxu0 %v2183_v43  ;;  %v2193_v43 = vld [vmem:[%s2467_s23 + $0x58] sm:$0xff]  }
 0x126   : >> { %1971 = vmatprep.subr.bf16.mxu0 %v2313_v34 }
 0x129   : >> { %1972 = vmatpush3.bf16.msra.mxu0 %v2184_v44 }
 0x12a   : >> { %1973 = vmatprep.subr.bf16.mxu0 %v2313_v34 }
 0x12d   : >> { %1974 = vmatpush3.bf16.msra.mxu0 %v2185_v45 }
 0x12e   : >> { %2003 = vmatprep.subr.bf16.mxu0 %v2313_v34 }
 0x189   : >> { %v2142_v48 = vpop.permute.xlu0 %2141 }
 0x18a   : >> { %v2144_v50 = vunpack.i.h.bf16 %v2142_v48  ;;  %v2143_v51 = vunpack.i.l.bf16 %v2142_v48 }
 0x18c   : >> { %v540_v57 = vsel %vm539_vm8, %v508_v53, %v2143_v51  ;;  %v541_v58 = vsel %vm539_vm8, %v502_v52, %v2144_v50 }
 0x18e   : >> { %v2147_v54 = vpop.permute.xlu0 %2146 }
 0x18f   : >> { %v2149_v55 = vunpack.i.h.bf16 %v2147_v54  ;;  %v2148_v56 = vunpack.i.l.bf16 %v2147_v54 }
 0x191   : >> { %v543_v59 = vsel %vm542_vm9, %v540_v57, %v2148_v56  ;;  %v544_v60 = vsel %vm542_vm9, %v541_v58, %v2149_v55 }
 0x192   : >> { %v545_v61 = vpack.c.bf16 %v544_v60, %v543_v59 }
 0x194   : >> { %1976 = vmatmul.mubr.msk.bf16.vlgmr.msra.gmra.mrb[0].mxu0 %vm605_vm10, %v545_v61 }
 0x195   : >> { %2007 = vmatprep.mubr.msk.bf16.mxu0 %vm2315_vm5, %v2313_v34 }
 0x267   : >> { %v643_v63 = vpop.f32.mrb[0].mxu0 }
 0x268   : >> { %v644_v0 = vadd.f32 %v1746_v62, %v643_v63  ;;  %v1977_v1 = vpop.f32.mrb[1].mxu0 }
 0x269   : >> { %v646_v6 = vpop.f32.mrb[2].mxu0 }
 0x26a   : >> { %2212 = vtanh.f32 %v644_v0  ;;  %v647_v7 = vadd.f32 %v1746_v62, %v646_v6  ;;  %v1978_v8 = vpop.f32.mrb[3].mxu0  ;;  %v1754_v12 = vmul.f32 -1.442695, %v644_v0 }
 0x26b   : >> { %v1778_v8 = vld [vmem:[%s2503_s10 + $0x1] ss:$0 sm:$0xff] }
 0x26c   : >> { %2214 = vtanh.f32 %v647_v7  ;;  %v1755_v13 = vmul.f32 -1.442695, %v647_v7  ;;  %v2194_v7 = vld [vmem:[%s2510_s14 + $0x10] sm:$0xff]  }
 0x26d   : >> { %2216 = vpow2.f32 %v1754_v12  ;;  %2004 = vmatpush3.bf16.msra.mxu0 %v2194_v7 }
 0x26e   : >> { %2218 = vpow2.f32 %v1755_v13  ;;  %2005 = vmatprep.subr.bf16.mxu0 %v2313_v34 }
 0x274   : >> { %v2213_v10 = vpop.eup %2212 }
 0x275   : >> { %666 = vrot.lane.b32.xlu1 %v2213_v10, %s2317_s15 }
 0x276   : >> { %v2215_v11 = vpop.eup %2214 }
 0x277   : >> { %v2217_v14 = vpop.eup %2216 }
 0x278   : >> { %v2219_v15 = vpop.eup %2218  ;;  %v656_v16 = vadd.f32 1.0, %v2217_v14 }
 0x279   : >> { %668 = vrot.lane.b32.xlu1 %v2215_v11, %s2317_s15  ;;  %v657_v17 = vadd.f32 1.0, %v2219_v15  ;;  %v2195_v15 = vld [vmem:[%s2510_s14 + $0x18] sm:$0xff]  }
 0x27a   : >> { %2220 = vrcp.f32 %v656_v16  ;;  %2006 = vmatpush3.bf16.msra.mxu0 %v2195_v15 }
 0x27b   : >> { %2222 = vrcp.f32 %v657_v17  ;;  %2011 = vmatprep.subr.bf16.mxu0 %v2313_v34 }
 0x284   : >> { %v2221_v19 = vpop.eup %2220 }
 0x285   : >> { %v2223_v20 = vpop.eup %2222 }
 0x2e7   : >> { %v667_v18 = vpop.permute.xlu1 %666 }
 0x2e8   : >> { %v672_v22 = vmul.f32 %v2221_v19, %v667_v18 }
 0x2eb   : >> { %v669_v21 = vpop.permute.xlu1 %668 }
 0x2ec   : >> { %v673_v23 = vmul.f32 %v2223_v20, %v669_v21 }
 0x2ee   : >> { %v674_v24 = vpack.c.bf16 %v673_v23, %v672_v22 }
 0x2f0   : >> { %1984 = vmatmul.mubr.msk.bf16.vlgmr.msra.gmra.mrb[0].mxu1 %vm539_vm8, %v674_v24 }
 0x2f1   : >> { %1999 = vmatprep.mubr.msk.bf16.mxu1 %vm2315_vm5, %v2313_v34  ;;  %1988 = vmatpush3.bf16.msra.mxu1 %v2188_v25 }
 0x2f2   : >> { %1989 = vmatprep.subr.bf16.mxu1 %v2313_v34 }
 0x2f5   : >> { %1990 = vmatpush3.bf16.msra.mxu1 %v2189_v26 }
 0x2f6   : >> { %1991 = vmatprep.subr.bf16.mxu1 %v2313_v34 }
 0x2f9   : >> { %1992 = vmatpush3.bf16.msra.mxu1 %v2190_v28 }
 0x2fa   : >> { %1993 = vmatprep.subr.bf16.mxu1 %v2313_v34 }
 0x2fd   : >> { %1994 = vmatpush3.bf16.msra.mxu1 %v2191_v32 }
 0x2fe   : >> { %1995 = vmatprep.subr.bf16.mxu1 %v2313_v34 }
 0x301   : >> { %1996 = vmatpush3.bf16.msra.mxu1 %v2192_v35 }
 0x302   : >> { %1997 = vmatprep.subr.bf16.mxu1 %v2313_v34 }
 0x305   : >> { %1998 = vmatpush3.bf16.msra.mxu1 %v2193_v43  ;;  %v2200_v43 = vld [vmem:[%s2467_s23 + $0x80] sm:$0xff]  }
 0x306   : >> { %2027 = vmatprep.subr.bf16.mxu1 %v2313_v34 }
 0x3c3   : >> { %v739_v36 = vpop.f32.mrb[0].mxu1 }
 0x3c4   : >> { %v2538_v37 = vadd.f32 %v1758_v33, %v739_v36  ;;  %v1985_v38 = vpop.f32.mrb[1].mxu1  ;;  %v2196_v36 = vld [vmem:[%s2467_s23 + $0x60] sm:$0xff]  }
 0x3c5   : >> { %v742_v39 = vpop.f32.mrb[2].mxu1  ;;  %v2197_v38 = vld [vmem:[%s2467_s23 + $0x68] sm:$0xff]  }
 0x3c6   : >> { %v746_v40 = vadd.f32 %v2305_v27, %v2538_v37  ;;  %v2543_v41 = vadd.f32 %v1758_v33, %v742_v39  ;;  %v1986_v42 = vpop.f32.mrb[3].mxu1  ;;  %v2198_v39 = vld [vmem:[%s2467_s23 + $0x70] sm:$0xff]  }
 0x3c7   : >> { %v1796_v42 = vld [vmem:[%s2534_s19 + $0x1] ss:$0 sm:$0xff] }
 0x3c8   : >> { %v2546_v44 = vmul.f32 0.70710677, %v746_v40  ;;  %v747_v45 = vadd.f32 %v2301_v29, %v2543_v41  ;;  %v2199_v40 = vld [vmem:[%s2467_s23 + $0x78] sm:$0xff]  }
 0x3ca   : >> { %v2551_v46 = vmul.f32 0.70710677, %v747_v45  ;;  %v768_v27 = vrot.slane %v2546_v44, 2  ;;  %v755_v53 = vrot.slane %v2546_v44, 6 }
 0x3cc   : >> { %v2150_v47 = vpack.i.bf16 %v2551_v46, %v2546_v44  ;;  %v769_v48 = vrot.slane %v2551_v46, 2  ;;  %v756_v52 = vrot.slane %v2551_v46, 6 }
 0x3ce   : >> { %2151 = vrot.lane.b32.xlu0 %v2150_v47, %s2314_s20  ;;  %v771_v49 = vsel %vm770_vm11, %v768_v27, %v769_v48  ;;  %v772_v29 = vsel %vm770_vm11, %v769_v48, %v768_v27  ;;  %v759_v57 = vsel %vm757_vm13, %v756_v52, %v755_v53  ;;  %v758_v59 = vsel %vm757_vm13, %v755_v53, %v756_v52 }
 0x3cf   : >> { %v778_v50 = vsel %vm767_vm12, %v772_v29, 0.0  ;;  %v764_v60 = vsel %vm753_vm14, %v759_v57, 0.0  ;;  %v750_v47 = vadd.f32 %v2297_v31, %v2538_v37  ;;  %v2201_v29 = vld [vmem:[%s2467_s23 + $0x88] sm:$0xff]  }
 0x3d0   : >> { %v2155_v51 = vpack.i.bf16 %v778_v50, %v771_v49  ;;  %v751_v50 = vadd.f32 %v2293_v30, %v2543_v41 }
 0x3d2   : >> { %2156 = vrot.lane.b32.xlu1 %v2155_v51, %s2316_s24 }
 0x440   : >> { %v2152_v54 = vpop.permute.xlu0 %2151 }
 0x441   : >> { %v2154_v55 = vunpack.i.h.bf16 %v2152_v54  ;;  %v2153_v56 = vunpack.i.l.bf16 %v2152_v54 }
 0x443   : >> { %v795_v63 = vsel %vm539_vm8, %v764_v60, %v2153_v56  ;;  %v796_v0 = vsel %vm539_vm8, %v758_v59, %v2154_v55 }
 0x444   : >> { %v2157_v58 = vpop.permute.xlu1 %2156 }
 0x445   : >> { %v2159_v61 = vunpack.i.h.bf16 %v2157_v58  ;;  %v2158_v62 = vunpack.i.l.bf16 %v2157_v58 }
 0x447   : >> { %v797_v1 = vsel %vm542_vm9, %v795_v63, %v2158_v62  ;;  %v798_v4 = vsel %vm542_vm9, %v796_v0, %v2159_v61 }
 0x448   : >> { %v799_v6 = vpack.c.bf16 %v798_v4, %v797_v1 }
 0x44a   : >> { %2000 = vmatmul.mubr.msk.bf16.vlgmr.msra.gmra.mrb[4].mxu1 %vm605_vm10, %v799_v6 }
 0x44b   : >> { %2031 = vmatprep.mubr.msk.bf16.mxu1 %vm2315_vm5, %v2313_v34 }
 0x51d   : >> { %v896_v9 = vpop.f32.mrb[4].mxu1 }
 0x51e   : >> { %v897_v10 = vadd.f32 %v1778_v8, %v896_v9  ;;  %v2001_v11 = vpop.f32.mrb[5].mxu1 }
 0x51f   : >> { %v899_v12 = vpop.f32.mrb[6].mxu1  ;;  %v2202_v11 = vld [vmem:[%s2510_s14 + $0x20] sm:$0xff]  }
 0x520   : >> { %2224 = vtanh.f32 %v897_v10  ;;  %v900_v13 = vadd.f32 %v1778_v8, %v899_v12  ;;  %v2002_v14 = vpop.f32.mrb[7].mxu1  ;;  %v1786_v18 = vmul.f32 -1.442695, %v897_v10  ;;  %2028 = vmatpush3.bf16.msra.mxu1 %v2202_v11  ;;  %v1816_v12 = vld [vmem:[%s2503_s10 + $0x2] ss:$0 sm:$0xff] }
 0x521   : >> { %2029 = vmatprep.subr.bf16.mxu1 %v2313_v34 }
 0x522   : >> { %2226 = vtanh.f32 %v900_v13  ;;  %v1787_v19 = vmul.f32 -1.442695, %v900_v13 }
 0x523   : >> { %2228 = vpow2.f32 %v1786_v18 }
 0x524   : >> { %2230 = vpow2.f32 %v1787_v19  ;;  %v2203_v19 = vld [vmem:[%s2510_s14 + $0x28] sm:$0xff]  }
 0x525   : >> { %2030 = vmatpush3.bf16.msra.mxu1 %v2203_v19 }
 0x526   : >> { %2035 = vmatprep.subr.bf16.mxu1 %v2313_v34 }
 0x52a   : >> { %v2225_v16 = vpop.eup %2224 }
 0x52b   : >> { %919 = vrot.lane.b32.xlu0 %v2225_v16, %s2317_s15 }
 0x52c   : >> { %v2227_v17 = vpop.eup %2226 }
 0x52d   : >> { %921 = vrot.lane.b32.xlu1 %v2227_v17, %s2317_s15  ;;  %v2229_v20 = vpop.eup %2228 }
 0x52e   : >> { %v2231_v21 = vpop.eup %2230  ;;  %v909_v22 = vadd.f32 1.0, %v2229_v20 }
 0x52f   : >> { %v910_v23 = vadd.f32 1.0, %v2231_v21 }
 0x530   : >> { %2232 = vrcp.f32 %v909_v22 }
 0x531   : >> { %2234 = vrcp.f32 %v910_v23 }
 0x53a   : >> { %v2233_v25 = vpop.eup %2232 }
 0x53b   : >> { %v2235_v26 = vpop.eup %2234 }
 0x59d   : >> { %v920_v24 = vpop.permute.xlu0 %919 }
 0x59e   : >> { %v925_v32 = vmul.f32 %v2233_v25, %v920_v24 }
 0x59f   : >> { %v922_v28 = vpop.permute.xlu1 %921 }
 0x5a0   : >> { %v926_v33 = vmul.f32 %v2235_v26, %v922_v28 }
 0x5a2   : >> { %v927_v35 = vpack.c.bf16 %v926_v33, %v925_v32 }
 0x5a4   : >> { %2008 = vmatmul.mubr.msk.bf16.vlgmr.msra.gmra.mrb[4].mxu0 %vm539_vm8, %v927_v35 }
 0x5a5   : >> { %2023 = vmatprep.mubr.msk.bf16.mxu0 %vm2315_vm5, %v2313_v34  ;;  %2012 = vmatpush3.bf16.msra.mxu0 %v2196_v36 }
 0x5a6   : >> { %2013 = vmatprep.subr.bf16.mxu0 %v2313_v34 }
 0x5a9   : >> { %2014 = vmatpush3.bf16.msra.mxu0 %v2197_v38 }
 0x5aa   : >> { %2015 = vmatprep.subr.bf16.mxu0 %v2313_v34 }
 0x5ad   : >> { %2016 = vmatpush3.bf16.msra.mxu0 %v2198_v39 }
 0x5ae   : >> { %2017 = vmatprep.subr.bf16.mxu0 %v2313_v34 }
 0x5b1   : >> { %2018 = vmatpush3.bf16.msra.mxu0 %v2199_v40 }
 0x5b2   : >> { %2019 = vmatprep.subr.bf16.mxu0 %v2313_v34 }
 0x5b5   : >> { %2020 = vmatpush3.bf16.msra.mxu0 %v2200_v43  ;;  %v2205_v43 = vld [vmem:[%s2467_s23 + $0x98] sm:$0xff]  }
 0x5b6   : >> { %2021 = vmatprep.subr.bf16.mxu0 %v2313_v34 }
 0x5b9   : >> { %2022 = vmatpush3.bf16.msra.mxu0 %v2201_v29 }
 0x5ba   : >> { %2051 = vmatprep.subr.bf16.mxu0 %v2313_v34 }
 0x677   : >> { %v992_v45 = vpop.f32.mrb[4].mxu0 }
 0x678   : >> { %v993_v27 = vadd.f32 %v1796_v42, %v992_v45  ;;  %v2009_v48 = vpop.f32.mrb[5].mxu0  ;;  %v2206_v45 = vld [vmem:[%s2467_s23 + $0xa0] sm:$0xff]  }
 0x679   : >> { %v995_v49 = vpop.f32.mrb[6].mxu0  ;;  %v1834_v48 = vld [vmem:[%s2534_s19 + $0x2] ss:$0 sm:$0xff] }
 0x67a   : >> { %v999_v51 = vadd.f32 %v993_v27, %v2546_v44  ;;  %v2599_v52 = vadd.f32 %v993_v27, %v750_v47  ;;  %v996_v53 = vadd.f32 %v1796_v42, %v995_v49  ;;  %v2010_v54 = vpop.f32.mrb[7].mxu0  ;;  %v2204_v42 = vld [vmem:[%s2467_s23 + $0x90] sm:$0xff]   ;;  %v2207_v47 = vld [vmem:[%s2467_s23 + $0xa8] sm:$0xff]   ;;  %v2209_v49 = vld [vmem:[%s2467_s23 + $0xb8] sm:$0xff]  }
 0x67b   : >> { %v2208_v27 = vld [vmem:[%s2467_s23 + $0xb0] sm:$0xff]  }
 0x67c   : >> { %v2601_v55 = vmul.f32 0.70710677, %v999_v51  ;;  %v1000_v31 = vadd.f32 %v996_v53, %v2551_v46  ;;  %v2604_v37 = vadd.f32 %v996_v53, %v751_v50 }
 0x67e   : >> { %v2607_v56 = vmul.f32 0.70710677, %v1000_v31  ;;  %v1008_v30 = vrot.slane %v2601_v55, 4 }
 0x680   : >> { %v1009_v41 = vrot.slane %v2607_v56, 4  ;;  %v2160_v44 = vpack.i.bf16 %v2607_v56, %v2601_v55 }
 0x682   : >> { %2161 = vrot.lane.b32.xlu0 %v2160_v44, %s2314_s20  ;;  %v1011_v46 = vsel %vm1010_vm15, %v1008_v30, %v1009_v41  ;;  %v1012_v57 = vsel %vm1010_vm15, %v1009_v41, %v1008_v30 }
 0x683   : >> { %v1026_v58 = vsel %vm1020_vm1, %v1012_v57, 0.0  ;;  %v1017_v0 = vsel %vm1006_vm2, %v1012_v57, 0.0 }
 0x684   : >> { %v2165_v59 = vpack.i.bf16 %v1026_v58, %v1011_v46 }
 0x686   : >> { %2166 = vrot.lane.b32.xlu1 %v2165_v59, %s2316_s24 }
 0x6f4   : >> { %v2162_v60 = vpop.permute.xlu0 %2161 }
 0x6f5   : >> { %v2164_v61 = vunpack.i.h.bf16 %v2162_v60  ;;  %v2163_v62 = vunpack.i.l.bf16 %v2162_v60 }
 0x6f7   : >> { %v1043_v6 = vsel %vm539_vm8, %v1017_v0, %v2163_v62  ;;  %v1044_v7 = vsel %vm539_vm8, %v1011_v46, %v2164_v61 }
 0x6f8   : >> { %v2167_v63 = vpop.permute.xlu1 %2166 }
 0x6f9   : >> { %v2169_v1 = vunpack.i.h.bf16 %v2167_v63  ;;  %v2168_v4 = vunpack.i.l.bf16 %v2167_v63 }
 0x6fb   : >> { %v1045_v8 = vsel %vm542_vm9, %v1043_v6, %v2168_v4  ;;  %v1046_v9 = vsel %vm542_vm9, %v1044_v7, %v2169_v1  ;;  %v2210_v7 = vld [vmem:[%s2510_s14 + $0x30] sm:$0xff]  }
 0x6fc   : >> { %v1047_v10 = vpack.c.bf16 %v1046_v9, %v1045_v8  ;;  %v1854_v8 = vld [vmem:[%s2503_s10 + $0x3] ss:$0 sm:$0xff] }
 0x6fe   : >> { %2024 = vmatmul.mubr.msk.bf16.vlgmr.msra.gmra.mrb[8].mxu0 %vm605_vm10, %v1047_v10 }
 0x6ff   : >> { %2055 = vmatprep.mubr.msk.bf16.mxu0 %vm2315_vm5, %v2313_v34  ;;  %2052 = vmatpush3.bf16.msra.mxu0 %v2210_v7 }
 0x700   : >> { %2053 = vmatprep.subr.bf16.mxu0 %v2313_v34 }
 0x7d1   : >> { %v1144_v13 = vpop.f32.mrb[8].mxu0 }
 0x7d2   : >> { %v1145_v14 = vadd.f32 %v1816_v12, %v1144_v13  ;;  %v2025_v15 = vpop.f32.mrb[9].mxu0 }
 0x7d3   : >> { %v1147_v16 = vpop.f32.mrb[10].mxu0  ;;  %v2211_v15 = vld [vmem:[%s2510_s14 + $0x38] sm:$0xff]  }
 0x7d4   : >> { %2236 = vtanh.f32 %v1145_v14  ;;  %v1148_v17 = vadd.f32 %v1816_v12, %v1147_v16  ;;  %v2026_v18 = vpop.f32.mrb[11].mxu0  ;;  %v1824_v22 = vmul.f32 -1.442695, %v1145_v14  ;;  %2054 = vmatpush3.bf16.msra.mxu0 %v2211_v15 }
 0x7d5   : > { %2059 = vmatprep.subr.bf16.mxu0 (%p488_p4), %v2311_v2 }
 0x7d6   : >> { %2238 = vtanh.f32 %v1148_v17  ;;  %v1825_v23 = vmul.f32 -1.442695, %v1148_v17 }
 0x7d7   : >> { %2240 = vpow2.f32 %v1824_v22 }
 0x7d8   : >> { %2242 = vpow2.f32 %v1825_v23 }
 0x7de   : >> { %v2237_v20 = vpop.eup %2236 }
 0x7df   : >> { %1167 = vrot.lane.b32.xlu0 %v2237_v20, %s2317_s15 }
 0x7e0   : >> { %v2239_v21 = vpop.eup %2238 }
 0x7e1   : >> { %1169 = vrot.lane.b32.xlu1 %v2239_v21, %s2317_s15  ;;  %v2241_v24 = vpop.eup %2240 }
 0x7e2   : >> { %v2243_v25 = vpop.eup %2242  ;;  %v1157_v26 = vadd.f32 1.0, %v2241_v24 }
 0x7e3   : >> { %v1158_v28 = vadd.f32 1.0, %v2243_v25 }
 0x7e4   : >> { %2244 = vrcp.f32 %v1157_v26 }
 0x7e5   : >> { %2246 = vrcp.f32 %v1158_v28 }
 0x7ee   : >> { %v2245_v33 = vpop.eup %2244 }
 0x7ef   : >> { %v2247_v35 = vpop.eup %2246 }
 0x851   : >> { %v1168_v32 = vpop.permute.xlu0 %1167 }
 0x852   : >> { %v1173_v38 = vmul.f32 %v2245_v33, %v1168_v32 }
 0x853   : >> { %v1170_v36 = vpop.permute.xlu1 %1169 }
 0x854   : >> { %v1174_v39 = vmul.f32 %v2247_v35, %v1170_v36  ;;  %v1872_v35 = vld [vmem:[%s2534_s19 + $0x3] ss:$0 sm:$0xff] }
 0x856   : >> { %v1175_v40 = vpack.c.bf16 %v1174_v39, %v1173_v38 }
 0x858   : >> { %2032 = vmatmul.mubr.msk.bf16.vlgmr.msra.gmra.mrb[8].mxu1 %vm539_vm8, %v1175_v40 }
 0x859   : >> { %2047 = vmatprep.mubr.msk.bf16.mxu1 %vm2315_vm5, %v2313_v34  ;;  %2036 = vmatpush3.bf16.msra.mxu1 %v2204_v42 }
 0x85a   : >> { %2037 = vmatprep.subr.bf16.mxu1 %v2313_v34 }
 0x85d   : >> { %2038 = vmatpush3.bf16.msra.mxu1 %v2205_v43 }
 0x85e   : >> { %2039 = vmatprep.subr.bf16.mxu1 %v2313_v34 }
 0x861   : >> { %2040 = vmatpush3.bf16.msra.mxu1 %v2206_v45 }
 0x862   : >> { %2041 = vmatprep.subr.bf16.mxu1 %v2313_v34 }
 0x865   : >> { %2042 = vmatpush3.bf16.msra.mxu1 %v2207_v47 }
 0x866   : >> { %2043 = vmatprep.subr.bf16.mxu1 %v2313_v34 }
 0x869   : >> { %2044 = vmatpush3.bf16.msra.mxu1 %v2208_v27 }
 0x86a   : >> { %2045 = vmatprep.subr.bf16.mxu1 %v2313_v34 }
 0x86d   : >> { %2046 = vmatpush3.bf16.msra.mxu1 %v2209_v49 }
 0x92b   : >> { %v1240_v29 = vpop.f32.mrb[8].mxu1 }
 0x92c   : >> { %v1241_v50 = vadd.f32 %v1834_v48, %v1240_v29  ;;  %v2033_v51 = vpop.f32.mrb[9].mxu1 }
 0x92d   : >> { %v1243_v53 = vpop.f32.mrb[10].mxu1  ;;  %v2318_v51 = vmov (%p488_p4), 0  }
 0x92e   : >> { %v1247_v54 = vadd.f32 %v1241_v50, %v2601_v55  ;;  %v2649_v31 = vadd.f32 %v1241_v50, %v2599_v52  ;;  %v1244_v30 = vadd.f32 %v1834_v48, %v1243_v53  ;;  %v2034_v41 = vpop.f32.mrb[11].mxu1  ;;  %v1496_v50 = vld [vmem:[%s2406_s26] sm:$0xff] (%p488_p4)  ;;  %2260 = vset.pattern.permute.xlu0 (%p488_p4), %v2318_v51  ;;  %v1497_v53 = vld [vmem:[%s2406_s26 + $0x8] sm:$0xff] (%p488_p4)  ;;  %s2319_s26 = smov (%p488_p4), 96  }
 0x930   : >> { %v1248_v44 = vadd.f32 %v1244_v30, %v2607_v56  ;;  %v2653_v46 = vadd.f32 %v1244_v30, %v2604_v37  ;;  %v1249_v57 = vmul.f32 0.70710677, %v1247_v54 }
 0x932   : >> { %v2655_v58 = vmul.f32 0.70710677, %v1248_v44 }
 0x934   : >> { %v2175_v59 = vpack.i.bf16 %v2313_v34, %v2655_v58  ;;  %v2170_v60 = vpack.i.bf16 %v2655_v58, %v1249_v57 }
 0x936   : >> { %2176 = vrot.lane.b32.xlu1 %v2175_v59, %s2316_s24  ;;  %2171 = vrot.lane.b32.xlu0 %v2170_v60, %s2314_s20 }
 0x9a8   : >> { %v2177_v52 = vpop.permute.xlu1 %2176  ;;  %v2172_v55 = vpop.permute.xlu0 %2171 }
 0x9a9   : >> { %v2179_v56 = vunpack.i.h.bf16 %v2177_v52  ;;  %v2178_v61 = vunpack.i.l.bf16 %v2177_v52  ;;  %v2174_v37 = vunpack.i.h.bf16 %v2172_v55  ;;  %v2173_v62 = vunpack.i.l.bf16 %v2172_v55 }
 0x9ab   : >> { %v1287_v63 = vsel %vm539_vm8, %v1249_v57, %v2174_v37  ;;  %v1286_v0 = vsel %vm539_vm8, 0.0, %v2173_v62 }
 0x9ac   : >> { %v1289_v1 = vsel %vm542_vm9, %v1287_v63, %v2179_v56  ;;  %v1288_v4 = vsel %vm542_vm9, %v1286_v0, %v2178_v61 }
 0x9ad   : >> { %v1290_v6 = vpack.c.bf16 %v1289_v1, %v1288_v4 }
 0x9af   : >> { %2048 = vmatmul.mubr.msk.bf16.vlgmr.msra.gmra.mrb[12].mxu1 %vm605_vm10, %v1290_v6 }
 0xa82   : >> { %v1387_v9 = vpop.f32.mrb[12].mxu1 }
 0xa83   : >> { %v1388_v10 = vadd.f32 %v1854_v8, %v1387_v9  ;;  %v2049_v11 = vpop.f32.mrb[13].mxu1 }
 0xa84   : >> { %v1390_v12 = vpop.f32.mrb[14].mxu1 }
 0xa85   : >> { %2248 = vtanh.f32 %v1388_v10  ;;  %v1391_v13 = vadd.f32 %v1854_v8, %v1390_v12  ;;  %v2050_v14 = vpop.f32.mrb[15].mxu1  ;;  %v1862_v18 = vmul.f32 -1.442695, %v1388_v10 }
 0xa87   : >> { %2250 = vtanh.f32 %v1391_v13  ;;  %v1863_v19 = vmul.f32 -1.442695, %v1391_v13 }
 0xa88   : >> { %2252 = vpow2.f32 %v1862_v18 }
 0xa89   : >> { %2254 = vpow2.f32 %v1863_v19 }
 0xa8f   : >> { %v2249_v16 = vpop.eup %2248 }
 0xa90   : >> { %1410 = vrot.lane.b32.xlu0 %v2249_v16, %s2317_s15 }
 0xa91   : >> { %v2251_v17 = vpop.eup %2250 }
 0xa92   : >> { %1412 = vrot.lane.b32.xlu1 %v2251_v17, %s2317_s15  ;;  %v2253_v34 = vpop.eup %2252 }
 0xa93   : >> { %v2255_v20 = vpop.eup %2254  ;;  %v1400_v21 = vadd.f32 1.0, %v2253_v34 }
 0xa94   : >> { %v1401_v22 = vadd.f32 1.0, %v2255_v20  ;;  %1500 = vperm.xlu0 (%p488_p4), %2260, %v1496_v50  }
 0xa95   : >> { %2256 = vrcp.f32 %v1400_v21 }
 0xa96   : >> { %2258 = vrcp.f32 %v1401_v22 }
 0xa98   : > { %1505 = vperm.xlu0 (%p488_p4), %2260, %v1497_v53  }
 0xa9f   : >> { %v2257_v24 = vpop.eup %2256 }
 0xaa0   : >> { %v2259_v25 = vpop.eup %2258 }
 0xb02   : >> { %v1411_v23 = vpop.permute.xlu0 %1410 }
 0xb03   : >> { %v1416_v28 = vmul.f32 %v2257_v24, %v1411_v23 }
 0xb04   : >> { %v1413_v26 = vpop.permute.xlu1 %1412 }
 0xb05   : >> { %v1417_v32 = vmul.f32 %v2259_v25, %v1413_v26 }
 0xb07   : >> { %v1418_v33 = vpack.c.bf16 %v1417_v32, %v1416_v28 }
 0xb09   : >> { %2056 = vmatmul.mubr.msk.bf16.vlgmr.msra.gmra.mrb[12].mxu0 %vm539_vm8, %v1418_v33 }
 0xb0a   : > { %2063 = vmatprep.mubr.msk.bf16.mxu0 (%p488_p4), %vm2312_vm0, %v2311_v2  ;;  %vm1583_vm0 = vcmask (%p488_p4), 519168  }
 0xb13   : > { %v1501_v5 = vpop.permute.xlu0 (%p488_p4), %1500 }
 0xbdc   : >> { %v1483_v36 = vpop.f32.mrb[12].mxu0 }
 0xbdd   : >> { %v1484_v38 = vadd.f32 %v1872_v35, %v1483_v36  ;;  %v2057_v39 = vpop.f32.mrb[13].mxu0  ;;  %490 = sbr.rel (!%p488_p4) target bundleno = 277 (0x115), region = 112 }
 0xbde   : >> { %v1486_v40 = vpop.f32.mrb[14].mxu0 }
 0xbdf   : >> { %v1490_v42 = vadd.f32 %v1484_v38, %v1249_v57  ;;  %v1494_v43 = vadd.f32 %v1484_v38, %v2649_v31   ;;  %v1487_v45 = vadd.f32 %v1872_v35, %v1486_v40  ;;  %v2058_v47 = vpop.f32.mrb[15].mxu0 }
 0xbe1   : >> { %v1492_v27 = vmul.f32 0.70710677, %v1490_v42   ;;  %v1491_v48 = vadd.f32 %v1487_v45, %v2655_v58  ;;  %v1495_v49 = vadd.f32 %v1487_v45, %v2653_v46   ;;  %v2718_v31 = vmov %v1494_v43 }
 0xbe2   : > { %v2261_v27 = vld [vmem:[%s2715_s8] sm:$0xff] (%p488_p4)   ;;  %v1508_v54 = vmul.f32 (%p488_p4), %v1501_v5, %v1494_v43 }
 0xbe3   : >> { %v1493_v29 = vmul.f32 0.70710677, %v1491_v48   ;;  %v2717_v30 = vmov %v1495_v49  ;;  %2060 = vmatpush3.bf16.msra.mxu0 (%p488_p4), %v2261_v27 }
 0xbe4   : > { %2061 = vmatprep.subr.bf16.mxu0 %v2311_v2  ;;  %v1506_v29 = vpop.permute.xlu0 %1505 }
 0xbe5   : > { %v1509_v31 = vmul.f32 %v1506_v29, %v1495_v49 }
 0xbe7   : > { %2062 = vmatpush3.bf16.msra.mxu0 %v2262_v3  ;;  %v1510_v30 = vpack.c.bf16 %v1509_v31, %v1508_v54 }
 0xbe9   : > { %1516 = vrot.lane.b32.xlu1 %v1510_v30, %s2319_s26 }
 0xc5b   : > { %v1517_v41 = vpop.permute.xlu1 %1516 }
 0xc5c   : > { %2064 = vmatmul.mubr.msk.bf16.vlgmr.msra.gmra.mrb[0].mxu0 %vm539_vm8, %v1517_v41 }
 0xd2f   : > { %v1568_v44 = vpop.f32.mrb[0].mxu0 }
 0xd30   : > { %v1892_v46 = vpack.c.bf16 %v1568_v44, %v1568_v44  ;;  %v2065_v57 = vpop.f32.mrb[1].mxu0 }
 0xd31   : > { %v1571_v58 = vpop.f32.mrb[2].mxu0 }
 0xd32   : > { %1584 = vst.msk [vmem:[%s2412_s29] sm:$0xf] %vm1583_vm0, %v1892_v46  ;;  %v1893_v2 = vpack.c.bf16 %v1571_v58, %v1571_v58  ;;  %v2066_v59 = vpop.f32.mrb[3].mxu0 }
 0xd34   : > { %1585 = vst.msk [vmem:[%s2412_s29 + $0x4] sm:$0xf] %vm1583_vm0, %v1893_v2 }
 0xd35 PF: > { %s19_s30 = sadd.s32 1, %s2289_s30  }
 0xd36   : > { %p16_p5 = scmp.ge.s32.totalorder %s19_s30, 4  }
 0xd38   :  { %18 = sbr.rel (!%p16_p5) target bundleno = 1 (0x1), region = 123 }

</bundles_post_ra>
